<compile_context>
chip_gen: v7x
topology: tpu7x:2x2x1
jax: 0.10.0
libtpu: 0.0.40
codegen_flags: <defaults>
</compile_context>

<pallas_src>
import math

import jax
import jax.numpy as jnp
from jax import lax
from jax.experimental import pallas as pl
from jax.experimental.pallas import tpu as pltpu


def _round_up(x, m):
    return ((x + m - 1) // m) * m


def reservoir_kernel(x_ref, a_ref, init_ref, w_ref, bias_ref, out_ref, hs_ref):
    """Reservoir recurrence + fused output projection for one batch tile.

    x_ref:    (l, tb, e)       embedded tokens (matmul dtype: f32 or bf16)
    a_ref:    (layers, e, e)   reservoir matrices, already transposed (use h @ a)
    init_ref: (1, e)  f32      initial hidden state
    w_ref:    (e, v)           to_prob weight, transposed (matmul dtype)
    bias_ref: (1, v)  f32      to_prob bias (contains -inf entries -> keep f32)
    out_ref:  (l, tb, v) f32   logits
    hs_ref:   (l, tb, e) f32   scratch: hidden states of the current layer
    """
    l, tb, e = x_ref.shape
    layers = a_ref.shape[0]
    v = out_ref.shape[-1]
    mm_dtype = a_ref.dtype

    # Initial hidden state broadcast once (shared across layers).
    h0 = jnp.broadcast_to(init_ref[...], (tb, e)).astype(jnp.float32)

    for layer in range(layers):  # static, small
        a_l = a_ref[layer]       # (e, e), pre-transposed in the wrapper (no XLU .T here)

        def body(i, h, _layer=layer, _a=a_l):
            # h_i = tanh(h_{i-1} @ A^T + x_i); layer 0 reads the token embedding,
            # deeper layers read the previous layer's hidden state from scratch.
            if _layer == 0:
                x_i = x_ref[i].astype(jnp.float32)
            else:
                x_i = hs_ref[i]
            h_new = jnp.tanh(
                jnp.dot(h.astype(mm_dtype), _a, preferred_element_type=jnp.float32)
                + x_i
            )
            hs_ref[i] = h_new
            return h_new

        # Serial, latency-bound recurrence: fully unroll so the scheduler can hoist
        # the carry-independent x/hs loads under the previous step's matmul + tanh.
        lax.fori_loop(0, l, body, h0, unroll=True)

    # Fused head: one lane-dense (l*tb, e) x (e, v) MXU matmul; bias added once in f32.
    hs_flat = hs_ref[...].reshape(l * tb, e)
    logits = (
        jnp.dot(hs_flat.astype(mm_dtype), w_ref[...], preferred_element_type=jnp.float32)
        + bias_ref[...]
    )
    out_ref[...] = logits.reshape(l, tb, v).astype(out_ref.dtype)


def reservoir_forward(tokens, emb_table, a, initial, w, bias, *, use_bf16=True,
                      batch_tile=None):
    """tokens: (b, l) int32.  Returns logits (b, l, num_tokens) in float32."""
    b, l = tokens.shape
    layers, e, _ = a.shape
    v = w.shape[0]

    mm_dtype = jnp.bfloat16 if use_bf16 else jnp.float32
    mm_bytes = jnp.dtype(mm_dtype).itemsize

    # Lane-dense padding: hidden size and vocab to multiples of 128.
    e_pad = _round_up(e, 128)
    v_pad = _round_up(v, 128)

    # Batch tile: at least 8 sublanes, at most 128 rows per recurrence matmul.
    if batch_tile is None:
        batch_tile = min(128, _round_up(b, 8))
    tb = max(8, _round_up(batch_tile, 8))

    def vmem_bytes(tb_):
        x_t = 2 * l * tb_ * e_pad * mm_bytes        # double-buffered input tile
        o_t = 2 * l * tb_ * v_pad * 4               # double-buffered output tile (f32)
        hs = l * tb_ * e_pad * 4                    # scratch hidden states (f32)
        wts = layers * e_pad * e_pad * mm_bytes + e_pad * v_pad * mm_bytes
        small = 2 * (e_pad + v_pad) * 4
        return x_t + o_t + hs + wts + small

    # Budget against the smallest generation (v7x: 64 MiB VMEM / TC) with headroom.
    budget = 40 * 1024 * 1024
    while tb > 8 and vmem_bytes(tb) > budget:
        tb = max(8, (tb // 2 // 8) * 8)
    b_pad = _round_up(b, tb)

    # ---- plain-JAX glue: embedding lookup, layout, padding, pre-transposes ----
    x = emb_table[tokens]                              # (b, l, e) gather
    x = jnp.transpose(x, (1, 0, 2))                    # (l, b, e)
    x = jnp.pad(x, ((0, 0), (0, b_pad - b), (0, e_pad - e))).astype(mm_dtype)

    a_t = jnp.transpose(a, (0, 2, 1))                  # recurrence uses h @ A^T
    a_t = jnp.pad(a_t, ((0, 0), (0, e_pad - e), (0, e_pad - e))).astype(mm_dtype)

    init2 = jnp.pad(initial.reshape(1, e), ((0, 0), (0, e_pad - e))).astype(jnp.float32)
    w_t = jnp.pad(jnp.transpose(w), ((0, e_pad - e), (0, v_pad - v))).astype(mm_dtype)
    bias2 = jnp.pad(bias.reshape(1, v), ((0, 0), (0, v_pad - v))).astype(jnp.float32)

    grid = (b_pad // tb,)
    vmem_limit = int(min(48 * 1024 * 1024, max(2 * vmem_bytes(tb), 8 * 1024 * 1024)))

    out = pl.pallas_call(
        reservoir_kernel,
        out_shape=jax.ShapeDtypeStruct((l, b_pad, v_pad), jnp.float32),
        grid=grid,
        in_specs=[
            pl.BlockSpec((l, tb, e_pad), lambda i: (0, i, 0)),          # x: tiled over batch
            pl.BlockSpec((layers, e_pad, e_pad), lambda i: (0, 0, 0)),  # A^T: whole
            pl.BlockSpec((1, e_pad), lambda i: (0, 0)),                 # initial state
            pl.BlockSpec((e_pad, v_pad), lambda i: (0, 0)),             # W^T: whole
            pl.BlockSpec((1, v_pad), lambda i: (0, 0)),                 # bias
        ],
        out_specs=pl.BlockSpec((l, tb, v_pad), lambda i: (0, i, 0)),
        scratch_shapes=[pltpu.VMEM((l, tb, e_pad), jnp.float32)],
        compiler_params=pltpu.CompilerParams(
            dimension_semantics=("parallel",),
            vmem_limit_bytes=vmem_limit,
        ),
    )(x, a_t, init2, w_t, bias2)

    out = out[:, :b, :v]                     # strip batch / vocab padding
    return jnp.transpose(out, (1, 0, 2))     # (b, l, num_tokens)


def make_params(key, emb, num_tokens, conn=8, init_var=0.1, max_out=8, layers=1):
    """Deterministically build parameters with the same shapes/structure as __init__."""
    k_emb, k_a, k_lin, k_out, k_permv = jax.random.split(key, 5)

    # nn.Embedding default init: N(0, 1)
    emb_table = jax.random.normal(k_emb, (num_tokens, emb), jnp.float32)

    # Reservoir matrices: conn random columns per row, rest zero, row-wise permuted.
    mats = []
    ka = k_a
    for _ in range(layers):
        ka, k1, k2 = jax.random.split(ka, 3)
        m = jax.random.normal(k1, (emb, conn), jnp.float32) * math.sqrt(init_var)
        m = jnp.concatenate([m, jnp.zeros((emb, emb - conn), jnp.float32)], axis=1)
        row_keys = jax.random.split(k2, emb)
        m = jnp.stack(
            [m[r][jax.random.permutation(row_keys[r], emb)] for r in range(emb)],
            axis=0,
        )
        mats.append(m[None])
    a = jnp.concatenate(mats, axis=0)  # (layers, emb, emb)

    initial = jnp.zeros((emb,), jnp.float32)

    # Output head: outtokens "live" rows (kaiming_uniform, a=sqrt(5) => U(-1/sqrt(emb), 1/sqrt(emb))),
    # the rest zero weights with -inf bias, then a random row permutation.
    outtokens = int(jax.random.randint(k_out, (), 2, max_out + 1))
    bound = 1.0 / math.sqrt(emb)
    lw = jax.random.uniform(k_lin, (outtokens, emb), jnp.float32, -bound, bound)
    lw = jnp.concatenate(
        [lw, jnp.zeros((num_tokens - outtokens, emb), jnp.float32)], axis=0
    )
    lb = jnp.concatenate(
        [
            jnp.zeros((outtokens,), jnp.float32),
            jnp.full((num_tokens - outtokens,), -jnp.inf, jnp.float32),
        ],
        axis=0,
    )
    perm = jax.random.permutation(k_permv, num_tokens)
    return emb_table, a, initial, lw[perm], lb[perm]


def reference_forward(tokens, emb_table, a, initial, w, bias):
    """Pure-JAX mirror of the PyTorch forward, for correctness checking."""
    b, l = tokens.shape
    e = emb_table.shape[1]
    x = emb_table[tokens]
    for ai in a:
        h = jnp.broadcast_to(initial, (b, e))
        hs = []
        for i in range(l):
            h = jnp.tanh(h @ ai.T + x[:, i, :])
            hs.append(h)
        x = jnp.stack(hs, axis=1)
    return x @ w.T + bias


if __name__ == "__main__":
    # Small shapes consistent with the module's forward: tokens (b, l) ints.
    B, L = 2, 8
    EMB, NUM_TOKENS, CONN, LAYERS = 32, 16, 8, 2

    key = jax.random.PRNGKey(0)
    k_params, k_tokens = jax.random.split(key)

    emb_table, a, initial, w, bias = make_params(
        k_params, EMB, NUM_TOKENS, conn=CONN, layers=LAYERS
    )
    tokens = jax.random.randint(k_tokens, (B, L), 0, NUM_TOKENS, dtype=jnp.int32)

    ref = reference_forward(tokens, emb_table, a, initial, w, bias)

    # Full-precision path: strict check against the pure-JAX reference.
    logits_f32 = jax.block_until_ready(
        reservoir_forward(tokens, emb_table, a, initial, w, bias, use_bf16=False)
    )
    assert logits_f32.shape == (B, L, NUM_TOKENS), logits_f32.shape
    assert bool(jnp.allclose(logits_f32, ref, atol=1e-5, rtol=1e-5)), "f32 mismatch vs reference"

    # bf16-matmul fast path (default): loose sanity check. tanh keeps the serial
    # recurrence stable, but bf16 operands cost a couple of decimal digits; the
    # strict correctness bar is the f32 run above.
    logits_bf16 = jax.block_until_ready(
        reservoir_forward(tokens, emb_table, a, initial, w, bias, use_bf16=True)
    )
    assert logits_bf16.shape == (B, L, NUM_TOKENS), logits_bf16.shape
    assert bool(jnp.allclose(logits_bf16, ref, atol=2e-1, rtol=1e-1)), "bf16 mismatch vs reference"

    print("KERNEL_OK")
</pallas_src>

<mosaic_0001>
module attributes {stable_mosaic.version = 11 : i64} {
  func.func @reservoir_kernel(%arg0: i32, %arg1: memref<8x8x128xf32, #tpu.memory_space<vmem>>, %arg2: memref<2x128x128xf32, #tpu.memory_space<vmem>>, %arg3: memref<1x128xf32, #tpu.memory_space<vmem>>, %arg4: memref<128x128xf32, #tpu.memory_space<vmem>>, %arg5: memref<1x128xf32, #tpu.memory_space<vmem>>, %arg6: memref<8x8x128xf32, #tpu.memory_space<vmem>>, %arg7: memref<8x8x128xf32, #tpu.memory_space<vmem>>) attributes {dimension_semantics = [#tpu.dimension_semantics<parallel>], iteration_bounds = array<i64: 1>, scalar_prefetch = 0 : i64, scratch_operands = 1 : i64, tpu.core_type = #tpu.core_type<tc>, window_params = [{transform_indices = @transform_0, window_bounds = array<i64: 8, 8, 128>}, {pipeline_mode = #tpu.pipeline_mode<synchronous>, transform_indices = @transform_1, window_bounds = array<i64: 2, 128, 128>}, {pipeline_mode = #tpu.pipeline_mode<synchronous>, transform_indices = @transform_2, window_bounds = array<i64: 1, 128>}, {pipeline_mode = #tpu.pipeline_mode<synchronous>, transform_indices = @transform_3, window_bounds = array<i64: 128, 128>}, {pipeline_mode = #tpu.pipeline_mode<synchronous>, transform_indices = @transform_4, window_bounds = array<i64: 1, 128>}, {transform_indices = @transform_5, window_bounds = array<i64: 8, 8, 128>}]} {
    %c0 = arith.constant 0 : index
    %c0_0 = arith.constant 0 : index
    %0 = vector.load %arg3[%c0, %c0_0] : memref<1x128xf32, #tpu.memory_space<vmem>>, vector<1x128xf32>
    %1 = vector.shape_cast %0 : vector<1x128xf32> to vector<1x128xf32>
    %2 = vector.broadcast %1 : vector<1x128xf32> to vector<8x128xf32>
    %c0_1 = arith.constant 0 : index
    %c0_2 = arith.constant 0 : index
    %c0_3 = arith.constant 0 : index
    %3 = vector.load %arg2[%c0_1, %c0_2, %c0_3] : memref<2x128x128xf32, #tpu.memory_space<vmem>>, vector<1x128x128xf32>
    %4 = vector.shape_cast %3 : vector<1x128x128xf32> to vector<128x128xf32>
    %c0_i32 = arith.constant 0 : i32
    %5 = arith.index_cast %c0_i32 : i32 to index
    %c0_4 = arith.constant 0 : index
    %c0_5 = arith.constant 0 : index
    %6 = vector.load %arg1[%5, %c0_4, %c0_5] : memref<8x8x128xf32, #tpu.memory_space<vmem>>, vector<1x8x128xf32>
    %7 = vector.shape_cast %6 : vector<1x8x128xf32> to vector<8x128xf32>
    %cst = arith.constant dense<0.000000e+00> : vector<8x128xf32>
    %8 = tpu.matmul %2, %4, %cst {dimension_numbers = #tpu.dot_dimension_numbers<[1], [0], [0], [1], [0, 0, 1, 1], [], []>} : vector<8x128xf32>, vector<128x128xf32>, vector<8x128xf32> -> vector<8x128xf32>
    %9 = arith.addf %8, %7 : vector<8x128xf32>
    %10 = math.tanh %9 : vector<8x128xf32>
    %11 = arith.index_cast %c0_i32 : i32 to index
    %c0_6 = arith.constant 0 : index
    %c0_7 = arith.constant 0 : index
    %12 = vector.load %arg7[%11, %c0_6, %c0_7] : memref<8x8x128xf32, #tpu.memory_space<vmem>>, vector<1x8x128xf32>
    %13 = vector.shape_cast %12 : vector<1x8x128xf32> to vector<8x128xf32>
    %14 = vector.shape_cast %10 : vector<8x128xf32> to vector<1x8x128xf32>
    tpu.vector_store %arg7[%11, %c0_6, %c0_7], %14 {strides = array<i32>} : memref<8x8x128xf32, #tpu.memory_space<vmem>>, vector<1x8x128xf32>,
    %c1_i32 = arith.constant 1 : i32
    %15 = arith.index_cast %c1_i32 : i32 to index
    %c0_8 = arith.constant 0 : index
    %c0_9 = arith.constant 0 : index
    %16 = vector.load %arg1[%15, %c0_8, %c0_9] : memref<8x8x128xf32, #tpu.memory_space<vmem>>, vector<1x8x128xf32>
    %17 = vector.shape_cast %16 : vector<1x8x128xf32> to vector<8x128xf32>
    %cst_10 = arith.constant dense<0.000000e+00> : vector<8x128xf32>
    %18 = tpu.matmul %10, %4, %cst_10 {dimension_numbers = #tpu.dot_dimension_numbers<[1], [0], [0], [1], [0, 0, 1, 1], [], []>} : vector<8x128xf32>, vector<128x128xf32>, vector<8x128xf32> -> vector<8x128xf32>
    %19 = arith.addf %18, %17 : vector<8x128xf32>
    %20 = math.tanh %19 : vector<8x128xf32>
    %21 = arith.index_cast %c1_i32 : i32 to index
    %c0_11 = arith.constant 0 : index
    %c0_12 = arith.constant 0 : index
    %22 = vector.load %arg7[%21, %c0_11, %c0_12] : memref<8x8x128xf32, #tpu.memory_space<vmem>>, vector<1x8x128xf32>
    %23 = vector.shape_cast %22 : vector<1x8x128xf32> to vector<8x128xf32>
    %24 = vector.shape_cast %20 : vector<8x128xf32> to vector<1x8x128xf32>
    tpu.vector_store %arg7[%21, %c0_11, %c0_12], %24 {strides = array<i32>} : memref<8x8x128xf32, #tpu.memory_space<vmem>>, vector<1x8x128xf32>,
    %c2_i32 = arith.constant 2 : i32
    %25 = arith.index_cast %c2_i32 : i32 to index
    %c0_13 = arith.constant 0 : index
    %c0_14 = arith.constant 0 : index
    %26 = vector.load %arg1[%25, %c0_13, %c0_14] : memref<8x8x128xf32, #tpu.memory_space<vmem>>, vector<1x8x128xf32>
    %27 = vector.shape_cast %26 : vector<1x8x128xf32> to vector<8x128xf32>
    %cst_15 = arith.constant dense<0.000000e+00> : vector<8x128xf32>
    %28 = tpu.matmul %20, %4, %cst_15 {dimension_numbers = #tpu.dot_dimension_numbers<[1], [0], [0], [1], [0, 0, 1, 1], [], []>} : vector<8x128xf32>, vector<128x128xf32>, vector<8x128xf32> -> vector<8x128xf32>
    %29 = arith.addf %28, %27 : vector<8x128xf32>
    %30 = math.tanh %29 : vector<8x128xf32>
    %31 = arith.index_cast %c2_i32 : i32 to index
    %c0_16 = arith.constant 0 : index
    %c0_17 = arith.constant 0 : index
    %32 = vector.load %arg7[%31, %c0_16, %c0_17] : memref<8x8x128xf32, #tpu.memory_space<vmem>>, vector<1x8x128xf32>
    %33 = vector.shape_cast %32 : vector<1x8x128xf32> to vector<8x128xf32>
    %34 = vector.shape_cast %30 : vector<8x128xf32> to vector<1x8x128xf32>
    tpu.vector_store %arg7[%31, %c0_16, %c0_17], %34 {strides = array<i32>} : memref<8x8x128xf32, #tpu.memory_space<vmem>>, vector<1x8x128xf32>,
    %c3_i32 = arith.constant 3 : i32
    %35 = arith.index_cast %c3_i32 : i32 to index
    %c0_18 = arith.constant 0 : index
    %c0_19 = arith.constant 0 : index
    %36 = vector.load %arg1[%35, %c0_18, %c0_19] : memref<8x8x128xf32, #tpu.memory_space<vmem>>, vector<1x8x128xf32>
    %37 = vector.shape_cast %36 : vector<1x8x128xf32> to vector<8x128xf32>
    %cst_20 = arith.constant dense<0.000000e+00> : vector<8x128xf32>
    %38 = tpu.matmul %30, %4, %cst_20 {dimension_numbers = #tpu.dot_dimension_numbers<[1], [0], [0], [1], [0, 0, 1, 1], [], []>} : vector<8x128xf32>, vector<128x128xf32>, vector<8x128xf32> -> vector<8x128xf32>
    %39 = arith.addf %38, %37 : vector<8x128xf32>
    %40 = math.tanh %39 : vector<8x128xf32>
    %41 = arith.index_cast %c3_i32 : i32 to index
    %c0_21 = arith.constant 0 : index
    %c0_22 = arith.constant 0 : index
    %42 = vector.load %arg7[%41, %c0_21, %c0_22] : memref<8x8x128xf32, #tpu.memory_space<vmem>>, vector<1x8x128xf32>
    %43 = vector.shape_cast %42 : vector<1x8x128xf32> to vector<8x128xf32>
    %44 = vector.shape_cast %40 : vector<8x128xf32> to vector<1x8x128xf32>
    tpu.vector_store %arg7[%41, %c0_21, %c0_22], %44 {strides = array<i32>} : memref<8x8x128xf32, #tpu.memory_space<vmem>>, vector<1x8x128xf32>,
    %c4_i32 = arith.constant 4 : i32
    %45 = arith.index_cast %c4_i32 : i32 to index
    %c0_23 = arith.constant 0 : index
    %c0_24 = arith.constant 0 : index
    %46 = vector.load %arg1[%45, %c0_23, %c0_24] : memref<8x8x128xf32, #tpu.memory_space<vmem>>, vector<1x8x128xf32>
    %47 = vector.shape_cast %46 : vector<1x8x128xf32> to vector<8x128xf32>
    %cst_25 = arith.constant dense<0.000000e+00> : vector<8x128xf32>
    %48 = tpu.matmul %40, %4, %cst_25 {dimension_numbers = #tpu.dot_dimension_numbers<[1], [0], [0], [1], [0, 0, 1, 1], [], []>} : vector<8x128xf32>, vector<128x128xf32>, vector<8x128xf32> -> vector<8x128xf32>
    %49 = arith.addf %48, %47 : vector<8x128xf32>
    %50 = math.tanh %49 : vector<8x128xf32>
    %51 = arith.index_cast %c4_i32 : i32 to index
    %c0_26 = arith.constant 0 : index
    %c0_27 = arith.constant 0 : index
    %52 = vector.load %arg7[%51, %c0_26, %c0_27] : memref<8x8x128xf32, #tpu.memory_space<vmem>>, vector<1x8x128xf32>
    %53 = vector.shape_cast %52 : vector<1x8x128xf32> to vector<8x128xf32>
    %54 = vector.shape_cast %50 : vector<8x128xf32> to vector<1x8x128xf32>
    tpu.vector_store %arg7[%51, %c0_26, %c0_27], %54 {strides = array<i32>} : memref<8x8x128xf32, #tpu.memory_space<vmem>>, vector<1x8x128xf32>,
    %c5_i32 = arith.constant 5 : i32
    %55 = arith.index_cast %c5_i32 : i32 to index
    %c0_28 = arith.constant 0 : index
    %c0_29 = arith.constant 0 : index
    %56 = vector.load %arg1[%55, %c0_28, %c0_29] : memref<8x8x128xf32, #tpu.memory_space<vmem>>, vector<1x8x128xf32>
    %57 = vector.shape_cast %56 : vector<1x8x128xf32> to vector<8x128xf32>
    %cst_30 = arith.constant dense<0.000000e+00> : vector<8x128xf32>
    %58 = tpu.matmul %50, %4, %cst_30 {dimension_numbers = #tpu.dot_dimension_numbers<[1], [0], [0], [1], [0, 0, 1, 1], [], []>} : vector<8x128xf32>, vector<128x128xf32>, vector<8x128xf32> -> vector<8x128xf32>
    %59 = arith.addf %58, %57 : vector<8x128xf32>
    %60 = math.tanh %59 : vector<8x128xf32>
    %61 = arith.index_cast %c5_i32 : i32 to index
    %c0_31 = arith.constant 0 : index
    %c0_32 = arith.constant 0 : index
    %62 = vector.load %arg7[%61, %c0_31, %c0_32] : memref<8x8x128xf32, #tpu.memory_space<vmem>>, vector<1x8x128xf32>
    %63 = vector.shape_cast %62 : vector<1x8x128xf32> to vector<8x128xf32>
    %64 = vector.shape_cast %60 : vector<8x128xf32> to vector<1x8x128xf32>
    tpu.vector_store %arg7[%61, %c0_31, %c0_32], %64 {strides = array<i32>} : memref<8x8x128xf32, #tpu.memory_space<vmem>>, vector<1x8x128xf32>,
    %c6_i32 = arith.constant 6 : i32
    %65 = arith.index_cast %c6_i32 : i32 to index
    %c0_33 = arith.constant 0 : index
    %c0_34 = arith.constant 0 : index
    %66 = vector.load %arg1[%65, %c0_33, %c0_34] : memref<8x8x128xf32, #tpu.memory_space<vmem>>, vector<1x8x128xf32>
    %67 = vector.shape_cast %66 : vector<1x8x128xf32> to vector<8x128xf32>
    %cst_35 = arith.constant dense<0.000000e+00> : vector<8x128xf32>
    %68 = tpu.matmul %60, %4, %cst_35 {dimension_numbers = #tpu.dot_dimension_numbers<[1], [0], [0], [1], [0, 0, 1, 1], [], []>} : vector<8x128xf32>, vector<128x128xf32>, vector<8x128xf32> -> vector<8x128xf32>
    %69 = arith.addf %68, %67 : vector<8x128xf32>
    %70 = math.tanh %69 : vector<8x128xf32>
    %71 = arith.index_cast %c6_i32 : i32 to index
    %c0_36 = arith.constant 0 : index
    %c0_37 = arith.constant 0 : index
    %72 = vector.load %arg7[%71, %c0_36, %c0_37] : memref<8x8x128xf32, #tpu.memory_space<vmem>>, vector<1x8x128xf32>
    %73 = vector.shape_cast %72 : vector<1x8x128xf32> to vector<8x128xf32>
    %74 = vector.shape_cast %70 : vector<8x128xf32> to vector<1x8x128xf32>
    tpu.vector_store %arg7[%71, %c0_36, %c0_37], %74 {strides = array<i32>} : memref<8x8x128xf32, #tpu.memory_space<vmem>>, vector<1x8x128xf32>,
    %c7_i32 = arith.constant 7 : i32
    %75 = arith.index_cast %c7_i32 : i32 to index
    %c0_38 = arith.constant 0 : index
    %c0_39 = arith.constant 0 : index
    %76 = vector.load %arg1[%75, %c0_38, %c0_39] : memref<8x8x128xf32, #tpu.memory_space<vmem>>, vector<1x8x128xf32>
    %77 = vector.shape_cast %76 : vector<1x8x128xf32> to vector<8x128xf32>
    %cst_40 = arith.constant dense<0.000000e+00> : vector<8x128xf32>
    %78 = tpu.matmul %70, %4, %cst_40 {dimension_numbers = #tpu.dot_dimension_numbers<[1], [0], [0], [1], [0, 0, 1, 1], [], []>} : vector<8x128xf32>, vector<128x128xf32>, vector<8x128xf32> -> vector<8x128xf32>
    %79 = arith.addf %78, %77 : vector<8x128xf32>
    %80 = math.tanh %79 : vector<8x128xf32>
    %81 = arith.index_cast %c7_i32 : i32 to index
    %c0_41 = arith.constant 0 : index
    %c0_42 = arith.constant 0 : index
    %82 = vector.load %arg7[%81, %c0_41, %c0_42] : memref<8x8x128xf32, #tpu.memory_space<vmem>>, vector<1x8x128xf32>
    %83 = vector.shape_cast %82 : vector<1x8x128xf32> to vector<8x128xf32>
    %84 = vector.shape_cast %80 : vector<8x128xf32> to vector<1x8x128xf32>
    tpu.vector_store %arg7[%81, %c0_41, %c0_42], %84 {strides = array<i32>} : memref<8x8x128xf32, #tpu.memory_space<vmem>>, vector<1x8x128xf32>,
    %c8_i32 = arith.constant 8 : i32
    %c1 = arith.constant 1 : index
    %c0_43 = arith.constant 0 : index
    %c0_44 = arith.constant 0 : index
    %85 = vector.load %arg2[%c1, %c0_43, %c0_44] : memref<2x128x128xf32, #tpu.memory_space<vmem>>, vector<1x128x128xf32>
    %86 = vector.shape_cast %85 : vector<1x128x128xf32> to vector<128x128xf32>
    %c0_i32_45 = arith.constant 0 : i32
    %87 = arith.index_cast %c0_i32_45 : i32 to index
    %c0_46 = arith.constant 0 : index
    %c0_47 = arith.constant 0 : index
    %88 = vector.load %arg7[%87, %c0_46, %c0_47] : memref<8x8x128xf32, #tpu.memory_space<vmem>>, vector<1x8x128xf32>
    %89 = vector.shape_cast %88 : vector<1x8x128xf32> to vector<8x128xf32>
    %cst_48 = arith.constant dense<0.000000e+00> : vector<8x128xf32>
    %90 = tpu.matmul %2, %86, %cst_48 {dimension_numbers = #tpu.dot_dimension_numbers<[1], [0], [0], [1], [0, 0, 1, 1], [], []>} : vector<8x128xf32>, vector<128x128xf32>, vector<8x128xf32> -> vector<8x128xf32>
    %91 = arith.addf %90, %89 : vector<8x128xf32>
    %92 = math.tanh %91 : vector<8x128xf32>
    %93 = arith.index_cast %c0_i32_45 : i32 to index
    %c0_49 = arith.constant 0 : index
    %c0_50 = arith.constant 0 : index
    %94 = vector.load %arg7[%93, %c0_49, %c0_50] : memref<8x8x128xf32, #tpu.memory_space<vmem>>, vector<1x8x128xf32>
    %95 = vector.shape_cast %94 : vector<1x8x128xf32> to vector<8x128xf32>
    %96 = vector.shape_cast %92 : vector<8x128xf32> to vector<1x8x128xf32>
    tpu.vector_store %arg7[%93, %c0_49, %c0_50], %96 {strides = array<i32>} : memref<8x8x128xf32, #tpu.memory_space<vmem>>, vector<1x8x128xf32>,
    %c1_i32_51 = arith.constant 1 : i32
    %97 = arith.index_cast %c1_i32_51 : i32 to index
    %c0_52 = arith.constant 0 : index
    %c0_53 = arith.constant 0 : index
    %98 = vector.load %arg7[%97, %c0_52, %c0_53] : memref<8x8x128xf32, #tpu.memory_space<vmem>>, vector<1x8x128xf32>
    %99 = vector.shape_cast %98 : vector<1x8x128xf32> to vector<8x128xf32>
    %cst_54 = arith.constant dense<0.000000e+00> : vector<8x128xf32>
    %100 = tpu.matmul %92, %86, %cst_54 {dimension_numbers = #tpu.dot_dimension_numbers<[1], [0], [0], [1], [0, 0, 1, 1], [], []>} : vector<8x128xf32>, vector<128x128xf32>, vector<8x128xf32> -> vector<8x128xf32>
    %101 = arith.addf %100, %99 : vector<8x128xf32>
    %102 = math.tanh %101 : vector<8x128xf32>
    %103 = arith.index_cast %c1_i32_51 : i32 to index
    %c0_55 = arith.constant 0 : index
    %c0_56 = arith.constant 0 : index
    %104 = vector.load %arg7[%103, %c0_55, %c0_56] : memref<8x8x128xf32, #tpu.memory_space<vmem>>, vector<1x8x128xf32>
    %105 = vector.shape_cast %104 : vector<1x8x128xf32> to vector<8x128xf32>
    %106 = vector.shape_cast %102 : vector<8x128xf32> to vector<1x8x128xf32>
    tpu.vector_store %arg7[%103, %c0_55, %c0_56], %106 {strides = array<i32>} : memref<8x8x128xf32, #tpu.memory_space<vmem>>, vector<1x8x128xf32>,
    %c2_i32_57 = arith.constant 2 : i32
    %107 = arith.index_cast %c2_i32_57 : i32 to index
    %c0_58 = arith.constant 0 : index
    %c0_59 = arith.constant 0 : index
    %108 = vector.load %arg7[%107, %c0_58, %c0_59] : memref<8x8x128xf32, #tpu.memory_space<vmem>>, vector<1x8x128xf32>
    %109 = vector.shape_cast %108 : vector<1x8x128xf32> to vector<8x128xf32>
    %cst_60 = arith.constant dense<0.000000e+00> : vector<8x128xf32>
    %110 = tpu.matmul %102, %86, %cst_60 {dimension_numbers = #tpu.dot_dimension_numbers<[1], [0], [0], [1], [0, 0, 1, 1], [], []>} : vector<8x128xf32>, vector<128x128xf32>, vector<8x128xf32> -> vector<8x128xf32>
    %111 = arith.addf %110, %109 : vector<8x128xf32>
    %112 = math.tanh %111 : vector<8x128xf32>
    %113 = arith.index_cast %c2_i32_57 : i32 to index
    %c0_61 = arith.constant 0 : index
    %c0_62 = arith.constant 0 : index
    %114 = vector.load %arg7[%113, %c0_61, %c0_62] : memref<8x8x128xf32, #tpu.memory_space<vmem>>, vector<1x8x128xf32>
    %115 = vector.shape_cast %114 : vector<1x8x128xf32> to vector<8x128xf32>
    %116 = vector.shape_cast %112 : vector<8x128xf32> to vector<1x8x128xf32>
    tpu.vector_store %arg7[%113, %c0_61, %c0_62], %116 {strides = array<i32>} : memref<8x8x128xf32, #tpu.memory_space<vmem>>, vector<1x8x128xf32>,
    %c3_i32_63 = arith.constant 3 : i32
    %117 = arith.index_cast %c3_i32_63 : i32 to index
    %c0_64 = arith.constant 0 : index
    %c0_65 = arith.constant 0 : index
    %118 = vector.load %arg7[%117, %c0_64, %c0_65] : memref<8x8x128xf32, #tpu.memory_space<vmem>>, vector<1x8x128xf32>
    %119 = vector.shape_cast %118 : vector<1x8x128xf32> to vector<8x128xf32>
    %cst_66 = arith.constant dense<0.000000e+00> : vector<8x128xf32>
    %120 = tpu.matmul %112, %86, %cst_66 {dimension_numbers = #tpu.dot_dimension_numbers<[1], [0], [0], [1], [0, 0, 1, 1], [], []>} : vector<8x128xf32>, vector<128x128xf32>, vector<8x128xf32> -> vector<8x128xf32>
    %121 = arith.addf %120, %119 : vector<8x128xf32>
    %122 = math.tanh %121 : vector<8x128xf32>
    %123 = arith.index_cast %c3_i32_63 : i32 to index
    %c0_67 = arith.constant 0 : index
    %c0_68 = arith.constant 0 : index
    %124 = vector.load %arg7[%123, %c0_67, %c0_68] : memref<8x8x128xf32, #tpu.memory_space<vmem>>, vector<1x8x128xf32>
    %125 = vector.shape_cast %124 : vector<1x8x128xf32> to vector<8x128xf32>
    %126 = vector.shape_cast %122 : vector<8x128xf32> to vector<1x8x128xf32>
    tpu.vector_store %arg7[%123, %c0_67, %c0_68], %126 {strides = array<i32>} : memref<8x8x128xf32, #tpu.memory_space<vmem>>, vector<1x8x128xf32>,
    %c4_i32_69 = arith.constant 4 : i32
    %127 = arith.index_cast %c4_i32_69 : i32 to index
    %c0_70 = arith.constant 0 : index
    %c0_71 = arith.constant 0 : index
    %128 = vector.load %arg7[%127, %c0_70, %c0_71] : memref<8x8x128xf32, #tpu.memory_space<vmem>>, vector<1x8x128xf32>
    %129 = vector.shape_cast %128 : vector<1x8x128xf32> to vector<8x128xf32>
    %cst_72 = arith.constant dense<0.000000e+00> : vector<8x128xf32>
    %130 = tpu.matmul %122, %86, %cst_72 {dimension_numbers = #tpu.dot_dimension_numbers<[1], [0], [0], [1], [0, 0, 1, 1], [], []>} : vector<8x128xf32>, vector<128x128xf32>, vector<8x128xf32> -> vector<8x128xf32>
    %131 = arith.addf %130, %129 : vector<8x128xf32>
    %132 = math.tanh %131 : vector<8x128xf32>
    %133 = arith.index_cast %c4_i32_69 : i32 to index
    %c0_73 = arith.constant 0 : index
    %c0_74 = arith.constant 0 : index
    %134 = vector.load %arg7[%133, %c0_73, %c0_74] : memref<8x8x128xf32, #tpu.memory_space<vmem>>, vector<1x8x128xf32>
    %135 = vector.shape_cast %134 : vector<1x8x128xf32> to vector<8x128xf32>
    %136 = vector.shape_cast %132 : vector<8x128xf32> to vector<1x8x128xf32>
    tpu.vector_store %arg7[%133, %c0_73, %c0_74], %136 {strides = array<i32>} : memref<8x8x128xf32, #tpu.memory_space<vmem>>, vector<1x8x128xf32>,
    %c5_i32_75 = arith.constant 5 : i32
    %137 = arith.index_cast %c5_i32_75 : i32 to index
    %c0_76 = arith.constant 0 : index
    %c0_77 = arith.constant 0 : index
    %138 = vector.load %arg7[%137, %c0_76, %c0_77] : memref<8x8x128xf32, #tpu.memory_space<vmem>>, vector<1x8x128xf32>
    %139 = vector.shape_cast %138 : vector<1x8x128xf32> to vector<8x128xf32>
    %cst_78 = arith.constant dense<0.000000e+00> : vector<8x128xf32>
    %140 = tpu.matmul %132, %86, %cst_78 {dimension_numbers = #tpu.dot_dimension_numbers<[1], [0], [0], [1], [0, 0, 1, 1], [], []>} : vector<8x128xf32>, vector<128x128xf32>, vector<8x128xf32> -> vector<8x128xf32>
    %141 = arith.addf %140, %139 : vector<8x128xf32>
    %142 = math.tanh %141 : vector<8x128xf32>
    %143 = arith.index_cast %c5_i32_75 : i32 to index
    %c0_79 = arith.constant 0 : index
    %c0_80 = arith.constant 0 : index
    %144 = vector.load %arg7[%143, %c0_79, %c0_80] : memref<8x8x128xf32, #tpu.memory_space<vmem>>, vector<1x8x128xf32>
    %145 = vector.shape_cast %144 : vector<1x8x128xf32> to vector<8x128xf32>
    %146 = vector.shape_cast %142 : vector<8x128xf32> to vector<1x8x128xf32>
    tpu.vector_store %arg7[%143, %c0_79, %c0_80], %146 {strides = array<i32>} : memref<8x8x128xf32, #tpu.memory_space<vmem>>, vector<1x8x128xf32>,
    %c6_i32_81 = arith.constant 6 : i32
    %147 = arith.index_cast %c6_i32_81 : i32 to index
    %c0_82 = arith.constant 0 : index
    %c0_83 = arith.constant 0 : index
    %148 = vector.load %arg7[%147, %c0_82, %c0_83] : memref<8x8x128xf32, #tpu.memory_space<vmem>>, vector<1x8x128xf32>
    %149 = vector.shape_cast %148 : vector<1x8x128xf32> to vector<8x128xf32>
    %cst_84 = arith.constant dense<0.000000e+00> : vector<8x128xf32>
    %150 = tpu.matmul %142, %86, %cst_84 {dimension_numbers = #tpu.dot_dimension_numbers<[1], [0], [0], [1], [0, 0, 1, 1], [], []>} : vector<8x128xf32>, vector<128x128xf32>, vector<8x128xf32> -> vector<8x128xf32>
    %151 = arith.addf %150, %149 : vector<8x128xf32>
    %152 = math.tanh %151 : vector<8x128xf32>
    %153 = arith.index_cast %c6_i32_81 : i32 to index
    %c0_85 = arith.constant 0 : index
    %c0_86 = arith.constant 0 : index
    %154 = vector.load %arg7[%153, %c0_85, %c0_86] : memref<8x8x128xf32, #tpu.memory_space<vmem>>, vector<1x8x128xf32>
    %155 = vector.shape_cast %154 : vector<1x8x128xf32> to vector<8x128xf32>
    %156 = vector.shape_cast %152 : vector<8x128xf32> to vector<1x8x128xf32>
    tpu.vector_store %arg7[%153, %c0_85, %c0_86], %156 {strides = array<i32>} : memref<8x8x128xf32, #tpu.memory_space<vmem>>, vector<1x8x128xf32>,
    %c7_i32_87 = arith.constant 7 : i32
    %157 = arith.index_cast %c7_i32_87 : i32 to index
    %c0_88 = arith.constant 0 : index
    %c0_89 = arith.constant 0 : index
    %158 = vector.load %arg7[%157, %c0_88, %c0_89] : memref<8x8x128xf32, #tpu.memory_space<vmem>>, vector<1x8x128xf32>
    %159 = vector.shape_cast %158 : vector<1x8x128xf32> to vector<8x128xf32>
    %cst_90 = arith.constant dense<0.000000e+00> : vector<8x128xf32>
    %160 = tpu.matmul %152, %86, %cst_90 {dimension_numbers = #tpu.dot_dimension_numbers<[1], [0], [0], [1], [0, 0, 1, 1], [], []>} : vector<8x128xf32>, vector<128x128xf32>, vector<8x128xf32> -> vector<8x128xf32>
    %161 = arith.addf %160, %159 : vector<8x128xf32>
    %162 = math.tanh %161 : vector<8x128xf32>
    %163 = arith.index_cast %c7_i32_87 : i32 to index
    %c0_91 = arith.constant 0 : index
    %c0_92 = arith.constant 0 : index
    %164 = vector.load %arg7[%163, %c0_91, %c0_92] : memref<8x8x128xf32, #tpu.memory_space<vmem>>, vector<1x8x128xf32>
    %165 = vector.shape_cast %164 : vector<1x8x128xf32> to vector<8x128xf32>
    %166 = vector.shape_cast %162 : vector<8x128xf32> to vector<1x8x128xf32>
    tpu.vector_store %arg7[%163, %c0_91, %c0_92], %166 {strides = array<i32>} : memref<8x8x128xf32, #tpu.memory_space<vmem>>, vector<1x8x128xf32>,
    %c8_i32_93 = arith.constant 8 : i32
    %c0_94 = arith.constant 0 : index
    %c0_95 = arith.constant 0 : index
    %c0_96 = arith.constant 0 : index
    %167 = vector.load %arg7[%c0_94, %c0_95, %c0_96] : memref<8x8x128xf32, #tpu.memory_space<vmem>>, vector<8x8x128xf32>
    %168 = vector.shape_cast %167 : vector<8x8x128xf32> to vector<64x128xf32>
    %c0_97 = arith.constant 0 : index
    %c0_98 = arith.constant 0 : index
    %169 = vector.load %arg4[%c0_97, %c0_98] : memref<128x128xf32, #tpu.memory_space<vmem>>, vector<128x128xf32>
    %cst_99 = arith.constant dense<0.000000e+00> : vector<64x128xf32>
    %170 = tpu.matmul %168, %169, %cst_99 {dimension_numbers = #tpu.dot_dimension_numbers<[1], [0], [0], [1], [0, 0, 1, 1], [], []>} : vector<64x128xf32>, vector<128x128xf32>, vector<64x128xf32> -> vector<64x128xf32>
    %c0_100 = arith.constant 0 : index
    %c0_101 = arith.constant 0 : index
    %171 = vector.load %arg5[%c0_100, %c0_101] : memref<1x128xf32, #tpu.memory_space<vmem>>, vector<1x128xf32>
    %172 = vector.broadcast %171 : vector<1x128xf32> to vector<64x128xf32>
    %173 = arith.addf %170, %172 : vector<64x128xf32>
    %174 = vector.shape_cast %173 : vector<64x128xf32> to vector<8x8x128xf32>
    %c0_102 = arith.constant 0 : index
    %c0_103 = arith.constant 0 : index
    %c0_104 = arith.constant 0 : index
    %175 = vector.load %arg6[%c0_102, %c0_103, %c0_104] : memref<8x8x128xf32, #tpu.memory_space<vmem>>, vector<8x8x128xf32>
    tpu.vector_store %arg6[%c0_102, %c0_103, %c0_104], %174 {strides = array<i32>} : memref<8x8x128xf32, #tpu.memory_space<vmem>>, vector<8x8x128xf32>,
    return
  }
  func.func @transform_0(%arg0: i32) -> (i32, i32, i32) {
    %c0_i32 = arith.constant 0 : i32
    %c0_i32_0 = arith.constant 0 : i32
    %c0_i32_1 = arith.constant 0 : i32
    return %c0_i32, %arg0, %c0_i32_0 : i32, i32, i32
  }
  func.func @transform_1(%arg0: i32) -> (i32, i32, i32) {
    %c0_i32 = arith.constant 0 : i32
    %c0_i32_0 = arith.constant 0 : i32
    %c0_i32_1 = arith.constant 0 : i32
    %c0_i32_2 = arith.constant 0 : i32
    return %c0_i32, %c0_i32_0, %c0_i32_1 : i32, i32, i32
  }
  func.func @transform_2(%arg0: i32) -> (i32, i32) {
    %c0_i32 = arith.constant 0 : i32
    %c0_i32_0 = arith.constant 0 : i32
    %c0_i32_1 = arith.constant 0 : i32
    return %c0_i32, %c0_i32_0 : i32, i32
  }
  func.func @transform_3(%arg0: i32) -> (i32, i32) {
    %c0_i32 = arith.constant 0 : i32
    %c0_i32_0 = arith.constant 0 : i32
    %c0_i32_1 = arith.constant 0 : i32
    return %c0_i32, %c0_i32_0 : i32, i32
  }
  func.func @transform_4(%arg0: i32) -> (i32, i32) {
    %c0_i32 = arith.constant 0 : i32
    %c0_i32_0 = arith.constant 0 : i32
    %c0_i32_1 = arith.constant 0 : i32
    return %c0_i32, %c0_i32_0 : i32, i32
  }
  func.func @transform_5(%arg0: i32) -> (i32, i32, i32) {
    %c0_i32 = arith.constant 0 : i32
    %c0_i32_0 = arith.constant 0 : i32
    %c0_i32_1 = arith.constant 0 : i32
    return %c0_i32, %arg0, %c0_i32_0 : i32, i32, i32
  }
}

</mosaic_0001>

<bundles_post_ra>
// kernel: tpu_custom_call.1
= control target key start
LH: loop header
LB: loop body
LE: loop exit
PB: predicated region body
PF: predicated region fallthrough
CT: control target
= control target key end

     0   :  { %10 = vsyncpa [#allocation4], 0  ;;  %s3386_s0 = inlined_call_operand.hbm [shape: f32[8,8,128], index: 0, kind: input, shape index: {}]   ;;  %s3387_s1 = inlined_call_operand.hbm [shape: f32[2,128,128], index: 1, kind: input, shape index: {}]   ;;  %s3388_s2 = inlined_call_operand.vmem [shape: f32[1,128], index: 2, kind: input, shape index: {}]   ;;  %s3389_s3 = inlined_call_operand.hbm [shape: f32[128,128], index: 3, kind: input, shape index: {}]   ;;  %s3390_s4 = inlined_call_operand.vmem [shape: f32[1,128], index: 4, kind: input, shape index: {}]   ;;  %s3391_s5 = inlined_call_operand.hbm [shape: f32[8,8,128], index: 5, kind: output, shape index: {}]  }
   0x1   :  { %11 = vsyncpa [#allocation7], 0 }
   0x2   :  { %12 = vsyncpa [#allocation5], 0  ;;  %s2899_s18 = smov [#allocation6]   ;;  %s2900_s20 = smov [#allocation3]  }
   0x3   :  { %s30_s19 = sshll.u32 %s2899_s18, 4  ;;  %s18_s21 = sshll.u32 %s2900_s20, 4  ;;  %s31_s19 = int_to_ptr.vmem [resolvable:$true] %s30_s19  ;;  %s2938_s21 = int_to_ptr.vmem [resolvable:$true] %s18_s21 }
   0x4   :  { %s2805_s24 = scalar_lea.hbm %s3387_s1, 4096 }
   0x5   :  { %p2806_p0 = scmp.ne.s32.totalorder %s3387_s1, %s2805_s24  ;;  %p2809_p1 = scmp.lt.u32.totalorder %s2805_s24, %s3387_s1 }
   0x7   :  { %p2811_p2 = pnand %p2809_p1, %p2806_p0 }
   0x9   :  { %2814 = shalt.err (!%p2811_p2)
}
   0xa   :  { %s2815_s29 = scalar_lea.vmem %s31_s19, 4096  ;;  %p2820_p4 = scmp.lt.s32.totalorder %s31_s19, %s31_s19 }
   0xb   :  { %p2816_p3 = scmp.ne.s32.totalorder %s31_s19, %s2815_s29  ;;  %p2821_p5 = scmp.lt.s32.totalorder %s2815_s29, %s2815_s29 }
   0xd   :  { %p2822_p6 = por %p2821_p5, %p2820_p4 }
   0xf   :  { %p2823_p7 = pnand %p2822_p6, %p2816_p3 }
  0x11   :  { %2826 = shalt.err (!%p2823_p7)
}
  0x12   :  { %s2901_s30 = smov 128   ;;  %s2902_s6 = smov 8  }
  0x13   :  { %36 = dma.hbm_to_vmem [thread:$0]  %s3387_s1, 4096, %s31_s19, [#allocation7], %s2901_s30, %s2901_s30, %s2902_s6  }
  0x14   :  { %s2827_s11 = scalar_lea.hbm %s3386_s0, 1024 }
  0x15   :  { %p2828_p8 = scmp.ne.s32.totalorder %s3386_s0, %s2827_s11  ;;  %p2831_p9 = scmp.lt.u32.totalorder %s2827_s11, %s3386_s0 }
  0x17   :  { %p2833_p10 = pnand %p2831_p9, %p2828_p8 }
  0x19   :  { %2836 = shalt.err (!%p2833_p10)
}
  0x1a   :  { %s2837_s16 = scalar_lea.vmem %s2938_s21, 1024  ;;  %p2842_p12 = scmp.lt.s32.totalorder %s2938_s21, %s2938_s21 }
  0x1b   :  { %p2838_p11 = scmp.ne.s32.totalorder %s2938_s21, %s2837_s16  ;;  %p2843_p13 = scmp.lt.s32.totalorder %s2837_s16, %s2837_s16 }
  0x1d   :  { %p2844_p0 = por %p2843_p13, %p2842_p12 }
  0x1f   :  { %p2845_p1 = pnand %p2844_p0, %p2838_p11 }
  0x21   :  { %2848 = shalt.err (!%p2845_p1)
}
  0x22   :  { %24 = dma.hbm_to_vmem [thread:$0]  %s3386_s0, 1024, %s2938_s21, [#allocation4], %s2901_s30, %s2901_s30, %s2902_s6  }
  0x23   :  { %s2903_s18 = smov [#allocation8]   ;;  %s2849_s23 = scalar_lea.hbm %s3389_s3, 2048 }
  0x24   :  { %s44_s19 = sshll.u32 %s2903_s18, 4  ;;  %p2850_p2 = scmp.ne.s32.totalorder %s3389_s3, %s2849_s23  ;;  %s45_s19 = int_to_ptr.vmem [resolvable:$true] %s44_s19 }
  0x25   :  { %p2853_p3 = scmp.lt.u32.totalorder %s2849_s23, %s3389_s3 }
  0x27   :  { %p2855_p4 = pnand %p2853_p3, %p2850_p2 }
  0x29   :  { %2858 = shalt.err (!%p2855_p4)
}
  0x2a   :  { %s2859_s28 = scalar_lea.vmem %s45_s19, 2048  ;;  %p2864_p6 = scmp.lt.s32.totalorder %s45_s19, %s45_s19 }
  0x2b   :  { %p2860_p5 = scmp.ne.s32.totalorder %s45_s19, %s2859_s28  ;;  %p2865_p7 = scmp.lt.s32.totalorder %s2859_s28, %s2859_s28 }
  0x2d   :  { %p2866_p8 = por %p2865_p7, %p2864_p6 }
  0x2f   :  { %p2867_p9 = pnand %p2866_p8, %p2860_p5 }
  0x31   :  { %2870 = shalt.err (!%p2867_p9)
}
  0x32   :  { %50 = dma.hbm_to_vmem [thread:$0]  %s3389_s3, 2048, %s45_s19, [#allocation7], %s2901_s30, %s2901_s30, %s2902_s6  }
  0x33   :  { %2893 = dma.done.wait [#allocation4], 1024  }
  0x34   :  { %2894 = vsyncadd [#allocation4], 4294966272 }
  0x35   :  { %2895 = dma.done.wait [#allocation7], 6144  }
  0x36   :  { %2896 = vsyncadd [#allocation7], 4294961152  ;;  %v2904_v0 = vmov 0.0|0.0   ;;  %vm2905_vm0 = vmmov 0   ;;  %v2906_v1 = vmov 0.0   ;;  %v69_v2 = vld [vmem:[#allocation6] sm:$0xff] }
  0x37   :  { %2348 = vmatprep.subr.bf16.mxu1 %v2904_v0  ;;  %1776 = vmatprep.mubr.msk.f32.mxu1 %vm2905_vm0, %v2906_v1  ;;  %v70_v3 = vld [vmem:[#allocation6 + $0x8] sm:$0xff]  ;;  %v71_v4 = vld [vmem:[#allocation6 + $0x10] sm:$0xff]  ;;  %v72_v6 = vld [vmem:[#allocation6 + $0x18] sm:$0xff] }
  0x38   :  { %2396 = vmatprep.subr.bf16.mxu0 %v2904_v0  ;;  %1846 = vmatprep.mubr.msk.f32.mxu0 %vm2905_vm0, %v2906_v1  ;;  %v2996_v5 = vpack.c.bf16 %v70_v3, %v69_v2  ;;  %v2999_v7 = vpack.c.bf16 %v72_v6, %v71_v4  ;;  %v73_v8 = vld [vmem:[#allocation6 + $0x20] sm:$0xff]  ;;  %v74_v9 = vld [vmem:[#allocation6 + $0x28] sm:$0xff]  ;;  %v75_v11 = vld [vmem:[#allocation6 + $0x30] sm:$0xff] }
  0x39   :  { %v3005_v10 = vpack.c.bf16 %v74_v9, %v73_v8  ;;  %v76_v12 = vld [vmem:[#allocation6 + $0x38] sm:$0xff]  ;;  %v77_v14 = vld [vmem:[#allocation6 + $0x40] sm:$0xff]  ;;  %v78_v15 = vld [vmem:[#allocation6 + $0x48] sm:$0xff] }
  0x3a   :  { %2350 = vmatpush3.bf16.msra.mxu1 %v2996_v5  ;;  %2398 = vmatpush3.bf16.msra.mxu0 %v2996_v5  ;;  %v3011_v13 = vpack.c.bf16 %v76_v12, %v75_v11  ;;  %v3017_v16 = vpack.c.bf16 %v78_v15, %v77_v14  ;;  %v79_v17 = vld [vmem:[#allocation6 + $0x50] sm:$0xff]  ;;  %v80_v18 = vld [vmem:[#allocation6 + $0x58] sm:$0xff]  ;;  %v81_v20 = vld [vmem:[#allocation6 + $0x60] sm:$0xff] }
  0x3b   :  { %2351 = vmatprep.subr.bf16.mxu1 %v2904_v0  ;;  %2399 = vmatprep.subr.bf16.mxu0 %v2904_v0  ;;  %v3023_v19 = vpack.c.bf16 %v80_v18, %v79_v17  ;;  %v82_v21 = vld [vmem:[#allocation6 + $0x68] sm:$0xff]  ;;  %v83_v23 = vld [vmem:[#allocation6 + $0x70] sm:$0xff]  ;;  %v84_v24 = vld [vmem:[#allocation6 + $0x78] sm:$0xff] }
  0x3c   :  { %v3029_v22 = vpack.c.bf16 %v82_v21, %v81_v20  ;;  %v3035_v25 = vpack.c.bf16 %v84_v24, %v83_v23  ;;  %v3044_v26 = vld [vmem:[%s3388_s2] ss:$0 sm:$0xff]  ;;  %v159_v32 = vld [vmem:[#allocation3 + $0x8] sm:$0xff]  ;;  %v234_v37 = vld [vmem:[#allocation3 + $0x10] sm:$0xff] }
  0x3d   :  { %v85_v27 = vld [vmem:[#allocation3] sm:$0xff]  ;;  %v309_v42 = vld [vmem:[#allocation3 + $0x18] sm:$0xff]  ;;  %v459_v52 = vld [vmem:[#allocation3 + $0x28] sm:$0xff] }
  0x3e   :  { %2353 = vmatpush3.bf16.msra.mxu1 %v2999_v7  ;;  %2401 = vmatpush3.bf16.msra.mxu0 %v2999_v7  ;;  %v384_v47 = vld [vmem:[#allocation3 + $0x20] sm:$0xff]  ;;  %v685_v57 = vld [vmem:[#allocation6 + $0x88] sm:$0xff]  ;;  %v686_v59 = vld [vmem:[#allocation6 + $0x90] sm:$0xff] }
  0x3f   :  { %2354 = vmatprep.subr.bf16.mxu1 %v2904_v0  ;;  %2402 = vmatprep.subr.bf16.mxu0 %v2904_v0  ;;  %v684_v56 = vld [vmem:[#allocation6 + $0x80] sm:$0xff]  ;;  %v687_v60 = vld [vmem:[#allocation6 + $0x98] sm:$0xff]  ;;  %v689_v2 = vld [vmem:[#allocation6 + $0xa8] sm:$0xff] }
  0x40   :  { %v3173_v58 = vpack.c.bf16 %v685_v57, %v684_v56  ;;  %v3179_v62 = vpack.c.bf16 %v687_v60, %v686_v59  ;;  %v688_v63 = vld [vmem:[#allocation6 + $0xa0] sm:$0xff]  ;;  %v690_v4 = vld [vmem:[#allocation6 + $0xb0] sm:$0xff]  ;;  %v693_v8 = vld [vmem:[#allocation6 + $0xc8] sm:$0xff] }
  0x41   :  { %v3185_v3 = vpack.c.bf16 %v689_v2, %v688_v63  ;;  %v695_v11 = vld [vmem:[#allocation6 + $0xd8] sm:$0xff]  ;;  %v697_v14 = vld [vmem:[#allocation6 + $0xe8] sm:$0xff]  ;;  %v1298_v57 = vld [vmem:[#allocation8 + $0x30] sm:$0xff] }
  0x42   :  { %2356 = vmatpush3.bf16.msra.mxu1 %v3005_v10  ;;  %2404 = vmatpush3.bf16.msra.mxu0 %v3005_v10  ;;  %v699_v17 = vld [vmem:[#allocation6 + $0xf8] sm:$0xff]  ;;  %v1297_v56 = vld [vmem:[#allocation8 + $0x28] sm:$0xff]  ;;  %v1300_v60 = vld [vmem:[#allocation8 + $0x40] sm:$0xff] }
  0x43   :  { %2357 = vmatprep.subr.bf16.mxu1 %v2904_v0  ;;  %2405 = vmatprep.subr.bf16.mxu0 %v2904_v0  ;;  %v1302_v63 = vld [vmem:[#allocation8 + $0x50] sm:$0xff]  ;;  %v1303_v2 = vld [vmem:[#allocation8 + $0x58] sm:$0xff] }
  0x46   :  { %2359 = vmatpush3.bf16.msra.mxu1 %v3011_v13  ;;  %2407 = vmatpush3.bf16.msra.mxu0 %v3011_v13 }
  0x47   :  { %2360 = vmatprep.subr.bf16.mxu1 %v2904_v0  ;;  %2408 = vmatprep.subr.bf16.mxu0 %v2904_v0 }
  0x4a   :  { %2362 = vmatpush3.bf16.msra.mxu1 %v3017_v16  ;;  %2410 = vmatpush3.bf16.msra.mxu0 %v3017_v16 }
  0x4b   :  { %2363 = vmatprep.subr.bf16.mxu1 %v2904_v0  ;;  %2411 = vmatprep.subr.bf16.mxu0 %v2904_v0 }
  0x4e   :  { %2365 = vmatpush3.bf16.msra.mxu1 %v3023_v19  ;;  %2413 = vmatpush3.bf16.msra.mxu0 %v3023_v19 }
  0x4f   :  { %2366 = vmatprep.subr.bf16.mxu1 %v2904_v0  ;;  %2414 = vmatprep.subr.bf16.mxu0 %v2904_v0 }
  0x52   :  { %2368 = vmatpush3.bf16.msra.mxu1 %v3029_v22  ;;  %2416 = vmatpush3.bf16.msra.mxu0 %v3029_v22 }
  0x53   :  { %2369 = vmatprep.subr.bf16.mxu1 %v2904_v0  ;;  %2417 = vmatprep.subr.bf16.mxu0 %v2904_v0 }
  0x56   :  { %2371 = vmatpush3.bf16.msra.mxu1 %v3035_v25  ;;  %2419 = vmatpush3.bf16.msra.mxu0 %v3035_v25 }
  0x57   :  { %2372 = vmatprep.subr.bf16.mxu1 %v2904_v0  ;;  %2444 = vmatprep.subr.bf16.mxu0 %v2904_v0 }
  0x59   :  { %1777 = vmatmul.mubr.f32.vlgmr.msra.gmra.mrb[0].mxu1 %v3044_v26 }
  0x5a   :  { %2374 = vmatpush3.bf16.msra.mxu1 %v2996_v5  ;;  %1811 = vmatprep.mubr.msk.f32.mxu1 %vm2905_vm0, %v2906_v1 }
  0x5b   :  { %2375 = vmatprep.subr.bf16.mxu1 %v2904_v0 }
  0x5e   :  { %2377 = vmatpush3.bf16.msra.mxu1 %v2999_v7 }
  0x5f   :  { %2378 = vmatprep.subr.bf16.mxu1 %v2904_v0 }
  0x62   :  { %2380 = vmatpush3.bf16.msra.mxu1 %v3005_v10 }
  0x63   :  { %2381 = vmatprep.subr.bf16.mxu1 %v2904_v0 }
  0x66   :  { %2383 = vmatpush3.bf16.msra.mxu1 %v3011_v13 }
  0x67   :  { %2384 = vmatprep.subr.bf16.mxu1 %v2904_v0 }
  0x6a   :  { %2386 = vmatpush3.bf16.msra.mxu1 %v3017_v16 }
  0x6b   :  { %2387 = vmatprep.subr.bf16.mxu1 %v2904_v0 }
  0x6e   :  { %2389 = vmatpush3.bf16.msra.mxu1 %v3023_v19 }
  0x6f   :  { %2390 = vmatprep.subr.bf16.mxu1 %v2904_v0 }
  0x72   :  { %2392 = vmatpush3.bf16.msra.mxu1 %v3029_v22 }
  0x73   :  { %2393 = vmatprep.subr.bf16.mxu1 %v2904_v0 }
  0x76   :  { %2395 = vmatpush3.bf16.msra.mxu1 %v3035_v25 }
  0x77   :  { %2420 = vmatprep.subr.bf16.mxu1 %v2904_v0 }
 0x12c   :  { %v152_v28 = vpop.f32.mrb[0].mxu1 }
 0x12d   :  { %v153_v29 = vadd.f32 %v152_v28, %v85_v27  ;;  %v1778_v30 = vpop.f32.mrb[1].mxu1 }
 0x12f   :  { %2773 = vtanh.f32 %v153_v29 }
 0x139   :  { %v3068_v31 = vpop.eup %2773 }
 0x13a   :  { %1812 = vmatmul.mubr.f32.vlgmr.msra.gmra.mrb[2].mxu1 %v3068_v31 }
 0x13b   :  { %2422 = vmatpush3.bf16.msra.mxu1 %v2996_v5  ;;  %1881 = vmatprep.mubr.msk.f32.mxu1 %vm2905_vm0, %v2906_v1 }
 0x13c   :  { %2423 = vmatprep.subr.bf16.mxu1 %v2904_v0 }
 0x13f   :  { %2425 = vmatpush3.bf16.msra.mxu1 %v2999_v7 }
 0x140   :  { %2426 = vmatprep.subr.bf16.mxu1 %v2904_v0 }
 0x143   :  { %2428 = vmatpush3.bf16.msra.mxu1 %v3005_v10 }
 0x144   :  { %2429 = vmatprep.subr.bf16.mxu1 %v2904_v0 }
 0x147   :  { %2431 = vmatpush3.bf16.msra.mxu1 %v3011_v13 }
 0x148   :  { %2432 = vmatprep.subr.bf16.mxu1 %v2904_v0 }
 0x14b   :  { %2434 = vmatpush3.bf16.msra.mxu1 %v3017_v16 }
 0x14c   :  { %2435 = vmatprep.subr.bf16.mxu1 %v2904_v0 }
 0x14f   :  { %2437 = vmatpush3.bf16.msra.mxu1 %v3023_v19 }
 0x150   :  { %2438 = vmatprep.subr.bf16.mxu1 %v2904_v0 }
 0x153   :  { %2440 = vmatpush3.bf16.msra.mxu1 %v3029_v22 }
 0x154   :  { %2441 = vmatprep.subr.bf16.mxu1 %v2904_v0 }
 0x157   :  { %2443 = vmatpush3.bf16.msra.mxu1 %v3035_v25 }
 0x158   :  { %2468 = vmatprep.subr.bf16.mxu1 %v2904_v0 }
 0x20d   :  { %v226_v33 = vpop.f32.mrb[2].mxu1 }
 0x20e   :  { %v227_v34 = vadd.f32 %v226_v33, %v159_v32  ;;  %v1813_v35 = vpop.f32.mrb[3].mxu1 }
 0x210   :  { %2775 = vtanh.f32 %v227_v34 }
 0x21a   :  { %v3089_v36 = vpop.eup %2775 }
 0x21b   :  { %1847 = vmatmul.mubr.f32.vlgmr.msra.gmra.mrb[0].mxu0 %v3089_v36 }
 0x21c   :  { %2446 = vmatpush3.bf16.msra.mxu0 %v2996_v5  ;;  %1916 = vmatprep.mubr.msk.f32.mxu0 %vm2905_vm0, %v2906_v1 }
 0x21d   :  { %2447 = vmatprep.subr.bf16.mxu0 %v2904_v0 }
 0x220   :  { %2449 = vmatpush3.bf16.msra.mxu0 %v2999_v7 }
 0x221   :  { %2450 = vmatprep.subr.bf16.mxu0 %v2904_v0 }
 0x224   :  { %2452 = vmatpush3.bf16.msra.mxu0 %v3005_v10 }
 0x225   :  { %2453 = vmatprep.subr.bf16.mxu0 %v2904_v0 }
 0x228   :  { %2455 = vmatpush3.bf16.msra.mxu0 %v3011_v13 }
 0x229   :  { %2456 = vmatprep.subr.bf16.mxu0 %v2904_v0 }
 0x22c   :  { %2458 = vmatpush3.bf16.msra.mxu0 %v3017_v16 }
 0x22d   :  { %2459 = vmatprep.subr.bf16.mxu0 %v2904_v0 }
 0x230   :  { %2461 = vmatpush3.bf16.msra.mxu0 %v3023_v19 }
 0x231   :  { %2462 = vmatprep.subr.bf16.mxu0 %v2904_v0 }
 0x234   :  { %2464 = vmatpush3.bf16.msra.mxu0 %v3029_v22 }
 0x235   :  { %2465 = vmatprep.subr.bf16.mxu0 %v2904_v0 }
 0x238   :  { %2467 = vmatpush3.bf16.msra.mxu0 %v3035_v25 }
 0x239   :  { %2492 = vmatprep.subr.bf16.mxu0 %v2904_v0 }
 0x2ee   :  { %v301_v38 = vpop.f32.mrb[0].mxu0 }
 0x2ef   :  { %v302_v39 = vadd.f32 %v301_v38, %v234_v37  ;;  %v1848_v40 = vpop.f32.mrb[1].mxu0 }
 0x2f1   :  { %2777 = vtanh.f32 %v302_v39 }
 0x2fb   :  { %v3110_v41 = vpop.eup %2777 }
 0x2fc   :  { %1882 = vmatmul.mubr.f32.vlgmr.msra.gmra.mrb[4].mxu1 %v3110_v41 }
 0x2fd   :  { %2470 = vmatpush3.bf16.msra.mxu1 %v2996_v5  ;;  %1951 = vmatprep.mubr.msk.f32.mxu1 %vm2905_vm0, %v2906_v1 }
 0x2fe   :  { %2471 = vmatprep.subr.bf16.mxu1 %v2904_v0 }
 0x301   :  { %2473 = vmatpush3.bf16.msra.mxu1 %v2999_v7 }
 0x302   :  { %2474 = vmatprep.subr.bf16.mxu1 %v2904_v0 }
 0x305   :  { %2476 = vmatpush3.bf16.msra.mxu1 %v3005_v10 }
 0x306   :  { %2477 = vmatprep.subr.bf16.mxu1 %v2904_v0 }
 0x309   :  { %2479 = vmatpush3.bf16.msra.mxu1 %v3011_v13 }
 0x30a   :  { %2480 = vmatprep.subr.bf16.mxu1 %v2904_v0 }
 0x30d   :  { %2482 = vmatpush3.bf16.msra.mxu1 %v3017_v16 }
 0x30e   :  { %2483 = vmatprep.subr.bf16.mxu1 %v2904_v0 }
 0x311   :  { %2485 = vmatpush3.bf16.msra.mxu1 %v3023_v19 }
 0x312   :  { %2486 = vmatprep.subr.bf16.mxu1 %v2904_v0 }
 0x315   :  { %2488 = vmatpush3.bf16.msra.mxu1 %v3029_v22 }
 0x316   :  { %2489 = vmatprep.subr.bf16.mxu1 %v2904_v0 }
 0x319   :  { %2491 = vmatpush3.bf16.msra.mxu1 %v3035_v25 }
 0x31a   :  { %2516 = vmatprep.subr.bf16.mxu1 %v2904_v0 }
 0x3cf   :  { %v376_v43 = vpop.f32.mrb[4].mxu1 }
 0x3d0   :  { %v377_v44 = vadd.f32 %v376_v43, %v309_v42  ;;  %v1883_v45 = vpop.f32.mrb[5].mxu1 }
 0x3d2   :  { %2779 = vtanh.f32 %v377_v44 }
 0x3dc   :  { %v3131_v46 = vpop.eup %2779 }
 0x3dd   :  { %1917 = vmatmul.mubr.f32.vlgmr.msra.gmra.mrb[2].mxu0 %v3131_v46 }
 0x3de   :  { %2494 = vmatpush3.bf16.msra.mxu0 %v2996_v5  ;;  %1986 = vmatprep.mubr.msk.f32.mxu0 %vm2905_vm0, %v2906_v1 }
 0x3df   :  { %2495 = vmatprep.subr.bf16.mxu0 %v2904_v0 }
 0x3e2   :  { %2497 = vmatpush3.bf16.msra.mxu0 %v2999_v7 }
 0x3e3   :  { %2498 = vmatprep.subr.bf16.mxu0 %v2904_v0 }
 0x3e6   :  { %2500 = vmatpush3.bf16.msra.mxu0 %v3005_v10 }
 0x3e7   :  { %2501 = vmatprep.subr.bf16.mxu0 %v2904_v0 }
 0x3ea   :  { %2503 = vmatpush3.bf16.msra.mxu0 %v3011_v13 }
 0x3eb   :  { %2504 = vmatprep.subr.bf16.mxu0 %v2904_v0 }
 0x3ee   :  { %2506 = vmatpush3.bf16.msra.mxu0 %v3017_v16 }
 0x3ef   :  { %2507 = vmatprep.subr.bf16.mxu0 %v2904_v0 }
 0x3f2   :  { %2509 = vmatpush3.bf16.msra.mxu0 %v3023_v19 }
 0x3f3   :  { %2510 = vmatprep.subr.bf16.mxu0 %v2904_v0 }
 0x3f6   :  { %2512 = vmatpush3.bf16.msra.mxu0 %v3029_v22 }
 0x3f7   :  { %2513 = vmatprep.subr.bf16.mxu0 %v2904_v0 }
 0x3fa   :  { %2515 = vmatpush3.bf16.msra.mxu0 %v3035_v25 }
 0x3fb   :  { %2540 = vmatprep.subr.bf16.mxu0 %v2904_v0 }
 0x4b0   :  { %v451_v48 = vpop.f32.mrb[2].mxu0 }
 0x4b1   :  { %v452_v49 = vadd.f32 %v451_v48, %v384_v47  ;;  %v1918_v50 = vpop.f32.mrb[3].mxu0 }
 0x4b3   :  { %2781 = vtanh.f32 %v452_v49 }
 0x4bd   :  { %v3152_v51 = vpop.eup %2781 }
 0x4be   :  { %1952 = vmatmul.mubr.f32.vlgmr.msra.gmra.mrb[6].mxu1 %v3152_v51 }
 0x4bf   :  { %2518 = vmatpush3.bf16.msra.mxu1 %v2996_v5  ;;  %2021 = vmatprep.mubr.msk.f32.mxu1 %vm2905_vm0, %v2906_v1  ;;  %v691_v5 = vld [vmem:[#allocation6 + $0xb8] sm:$0xff] }
 0x4c0   :  { %2519 = vmatprep.subr.bf16.mxu1 %v2904_v0  ;;  %v3189_v6 = vpack.c.bf16 %v691_v5, %v690_v4  ;;  %v1304_v4 = vld [vmem:[#allocation8 + $0x60] sm:$0xff]  ;;  %v1305_v5 = vld [vmem:[#allocation8 + $0x68] sm:$0xff] }
 0x4c3   :  { %2521 = vmatpush3.bf16.msra.mxu1 %v2999_v7  ;;  %v692_v7 = vld [vmem:[#allocation6 + $0xc0] sm:$0xff] }
 0x4c4   :  { %2522 = vmatprep.subr.bf16.mxu1 %v2904_v0  ;;  %v3193_v9 = vpack.c.bf16 %v693_v8, %v692_v7  ;;  %v1306_v7 = vld [vmem:[#allocation8 + $0x70] sm:$0xff]  ;;  %v1307_v8 = vld [vmem:[#allocation8 + $0x78] sm:$0xff] }
 0x4c7   :  { %2524 = vmatpush3.bf16.msra.mxu1 %v3005_v10  ;;  %v694_v10 = vld [vmem:[#allocation6 + $0xd0] sm:$0xff] }
 0x4c8   :  { %2525 = vmatprep.subr.bf16.mxu1 %v2904_v0  ;;  %v3197_v12 = vpack.c.bf16 %v695_v11, %v694_v10 }
 0x4cb   :  { %2527 = vmatpush3.bf16.msra.mxu1 %v3011_v13  ;;  %v696_v13 = vld [vmem:[#allocation6 + $0xe0] sm:$0xff] }
 0x4cc   :  { %2528 = vmatprep.subr.bf16.mxu1 %v2904_v0  ;;  %v3201_v15 = vpack.c.bf16 %v697_v14, %v696_v13  ;;  %v1447_v14 = vld [vmem:[%s3390_s4] ss:$0 sm:$0xff]  ;;  %s2907_s4 = smov [#allocation9]  }
 0x4cd   :  { %s1433_s8 = sshll.u32 %s2907_s4, 4  ;;  %s1434_s8 = int_to_ptr.vmem [resolvable:$true] %s1433_s8 }
 0x4ce   :  { %s2871_s9 = scalar_lea.vmem %s1434_s8, 1024  ;;  %p2876_p11 = scmp.lt.s32.totalorder %s1434_s8, %s1434_s8 }
 0x4cf   :  { %2530 = vmatpush3.bf16.msra.mxu1 %v3017_v16  ;;  %v698_v16 = vld [vmem:[#allocation6 + $0xf0] sm:$0xff]  ;;  %p2872_p10 = scmp.ne.s32.totalorder %s1434_s8, %s2871_s9  ;;  %p2877_p12 = scmp.lt.s32.totalorder %s2871_s9, %s2871_s9 }
 0x4d0   :  { %2531 = vmatprep.subr.bf16.mxu1 %v2904_v0  ;;  %v3205_v18 = vpack.c.bf16 %v699_v17, %v698_v16 }
 0x4d1   :  { %p2878_p13 = por %p2877_p12, %p2876_p11 }
 0x4d3   :  { %2533 = vmatpush3.bf16.msra.mxu1 %v3023_v19  ;;  %v534_v19 = vld [vmem:[#allocation3 + $0x30] sm:$0xff]  ;;  %p2879_p0 = pnand %p2878_p13, %p2872_p10 }
 0x4d4   :  { %2534 = vmatprep.subr.bf16.mxu1 %v2904_v0 }
 0x4d7   :  { %2536 = vmatpush3.bf16.msra.mxu1 %v3029_v22 }
 0x4d8   :  { %2537 = vmatprep.subr.bf16.mxu1 %v2904_v0 }
 0x4db   :  { %2539 = vmatpush3.bf16.msra.mxu1 %v3035_v25 }
 0x4dc   :  { %2564 = vmatprep.subr.bf16.mxu1 %v2904_v0 }
 0x591   :  { %v526_v53 = vpop.f32.mrb[6].mxu1 }
 0x592   :  { %v527_v54 = vadd.f32 %v526_v53, %v459_v52  ;;  %v1953_v55 = vpop.f32.mrb[7].mxu1  ;;  %v1295_v52 = vld [vmem:[#allocation8 + $0x18] sm:$0xff] }
 0x593   :  { %v1296_v55 = vld [vmem:[#allocation8 + $0x20] sm:$0xff] }
 0x594   :  { %2783 = vtanh.f32 %v527_v54 }
 0x59e   :  { %v3175_v61 = vpop.eup %2783 }
 0x59f   :  { %1987 = vmatmul.mubr.f32.vlgmr.msra.gmra.mrb[4].mxu0 %v3175_v61 }
 0x5a0   :  { %2542 = vmatpush3.bf16.msra.mxu0 %v3173_v58  ;;  %2056 = vmatprep.mubr.msk.f32.mxu0 %vm2905_vm0, %v2906_v1 }
 0x5a1   :  { %2543 = vmatprep.subr.bf16.mxu0 %v2904_v0 }
 0x5a4   :  { %2545 = vmatpush3.bf16.msra.mxu0 %v3179_v62 }
 0x5a5   :  { %2546 = vmatprep.subr.bf16.mxu0 %v2904_v0 }
 0x5a8   :  { %2548 = vmatpush3.bf16.msra.mxu0 %v3185_v3 }
 0x5a9   :  { %2549 = vmatprep.subr.bf16.mxu0 %v2904_v0 }
 0x5ac   :  { %2551 = vmatpush3.bf16.msra.mxu0 %v3189_v6 }
 0x5ad   :  { %2552 = vmatprep.subr.bf16.mxu0 %v2904_v0 }
 0x5b0   :  { %2554 = vmatpush3.bf16.msra.mxu0 %v3193_v9 }
 0x5b1   :  { %2555 = vmatprep.subr.bf16.mxu0 %v2904_v0 }
 0x5b4   :  { %2557 = vmatpush3.bf16.msra.mxu0 %v3197_v12 }
 0x5b5   :  { %2558 = vmatprep.subr.bf16.mxu0 %v2904_v0 }
 0x5b8   :  { %2560 = vmatpush3.bf16.msra.mxu0 %v3201_v15 }
 0x5b9   :  { %2561 = vmatprep.subr.bf16.mxu0 %v2904_v0 }
 0x5bc   :  { %2563 = vmatpush3.bf16.msra.mxu0 %v3205_v18 }
 0x5bd   :  { %2588 = vmatprep.subr.bf16.mxu0 %v2904_v0 }
 0x5bf   :  { %2057 = vmatmul.mubr.f32.vlgmr.msra.gmra.mrb[6].mxu0 %v3044_v26 }
 0x5c0   :  { %2590 = vmatpush3.bf16.msra.mxu0 %v3173_v58  ;;  %2126 = vmatprep.mubr.msk.f32.mxu0 %vm2905_vm0, %v2906_v1 }
 0x5c1   :  { %2591 = vmatprep.subr.bf16.mxu0 %v2904_v0 }
 0x5c4   :  { %2593 = vmatpush3.bf16.msra.mxu0 %v3179_v62 }
 0x5c5   :  { %2594 = vmatprep.subr.bf16.mxu0 %v2904_v0 }
 0x5c8   :  { %2596 = vmatpush3.bf16.msra.mxu0 %v3185_v3 }
 0x5c9   :  { %2597 = vmatprep.subr.bf16.mxu0 %v2904_v0 }
 0x5cc   :  { %2599 = vmatpush3.bf16.msra.mxu0 %v3189_v6 }
 0x5cd   :  { %2600 = vmatprep.subr.bf16.mxu0 %v2904_v0 }
 0x5d0   :  { %2602 = vmatpush3.bf16.msra.mxu0 %v3193_v9 }
 0x5d1   :  { %2603 = vmatprep.subr.bf16.mxu0 %v2904_v0 }
 0x5d4   :  { %2605 = vmatpush3.bf16.msra.mxu0 %v3197_v12 }
 0x5d5   :  { %2606 = vmatprep.subr.bf16.mxu0 %v2904_v0 }
 0x5d8   :  { %2608 = vmatpush3.bf16.msra.mxu0 %v3201_v15 }
 0x5d9   :  { %2609 = vmatprep.subr.bf16.mxu0 %v2904_v0 }
 0x5dc   :  { %2611 = vmatpush3.bf16.msra.mxu0 %v3205_v18 }
 0x5dd   :  { %2636 = vmatprep.subr.bf16.mxu0 %v2904_v0 }
 0x672   :  { %v601_v20 = vpop.f32.mrb[4].mxu0 }
 0x673   :  { %v602_v21 = vadd.f32 %v601_v20, %v534_v19  ;;  %v1988_v22 = vpop.f32.mrb[5].mxu0 }
 0x675   :  { %2785 = vtanh.f32 %v602_v21 }
 0x67f   :  { %v3229_v23 = vpop.eup %2785 }
 0x680   :  { %2022 = vmatmul.mubr.f32.vlgmr.msra.gmra.mrb[8].mxu1 %v3229_v23 }
 0x681   :  { %2566 = vmatpush3.bf16.msra.mxu1 %v3173_v58  ;;  %2091 = vmatprep.mubr.msk.f32.mxu1 %vm2905_vm0, %v2906_v1 }
 0x682   :  { %2567 = vmatprep.subr.bf16.mxu1 %v2904_v0 }
 0x685   :  { %2569 = vmatpush3.bf16.msra.mxu1 %v3179_v62 }
 0x686   :  { %2570 = vmatprep.subr.bf16.mxu1 %v2904_v0 }
 0x689   :  { %2572 = vmatpush3.bf16.msra.mxu1 %v3185_v3 }
 0x68a   :  { %2573 = vmatprep.subr.bf16.mxu1 %v2904_v0 }
 0x68d   :  { %2575 = vmatpush3.bf16.msra.mxu1 %v3189_v6 }
 0x68e   :  { %2576 = vmatprep.subr.bf16.mxu1 %v2904_v0 }
 0x691   :  { %2578 = vmatpush3.bf16.msra.mxu1 %v3193_v9 }
 0x692   :  { %v767_v24 = vpop.f32.mrb[6].mxu0  ;;  %2579 = vmatprep.subr.bf16.mxu1 %v2904_v0 }
 0x693   :  { %v768_v25 = vadd.f32 %v3068_v31, %v767_v24  ;;  %v2058_v26 = vpop.f32.mrb[7].mxu0 }
 0x695   :  { %2787 = vtanh.f32 %v768_v25  ;;  %2581 = vmatpush3.bf16.msra.mxu1 %v3197_v12 }
 0x696   :  { %2582 = vmatprep.subr.bf16.mxu1 %v2904_v0 }
 0x699   :  { %2584 = vmatpush3.bf16.msra.mxu1 %v3201_v15 }
 0x69a   :  { %2585 = vmatprep.subr.bf16.mxu1 %v2904_v0 }
 0x69d   :  { %2587 = vmatpush3.bf16.msra.mxu1 %v3205_v18 }
 0x69e   :  { %2612 = vmatprep.subr.bf16.mxu1 %v2904_v0 }
 0x69f   :  { %v3251_v27 = vpop.eup %2787 }
 0x6a0   :  { %2092 = vmatmul.mubr.f32.vlgmr.msra.gmra.mrb[10].mxu1 %v3251_v27 }
 0x6a1   :  { %2614 = vmatpush3.bf16.msra.mxu1 %v3173_v58  ;;  %2161 = vmatprep.mubr.msk.f32.mxu1 %vm2905_vm0, %v2906_v1 }
 0x6a2   :  { %2615 = vmatprep.subr.bf16.mxu1 %v2904_v0 }
 0x6a5   :  { %2617 = vmatpush3.bf16.msra.mxu1 %v3179_v62 }
 0x6a6   :  { %2618 = vmatprep.subr.bf16.mxu1 %v2904_v0 }
 0x6a9   :  { %2620 = vmatpush3.bf16.msra.mxu1 %v3185_v3 }
 0x6aa   :  { %2621 = vmatprep.subr.bf16.mxu1 %v2904_v0 }
 0x6ad   :  { %2623 = vmatpush3.bf16.msra.mxu1 %v3189_v6 }
 0x6ae   :  { %2624 = vmatprep.subr.bf16.mxu1 %v2904_v0 }
 0x6b1   :  { %2626 = vmatpush3.bf16.msra.mxu1 %v3193_v9 }
 0x6b2   :  { %2627 = vmatprep.subr.bf16.mxu1 %v2904_v0 }
 0x6b5   :  { %2629 = vmatpush3.bf16.msra.mxu1 %v3197_v12 }
 0x6b6   :  { %2630 = vmatprep.subr.bf16.mxu1 %v2904_v0 }
 0x6b9   :  { %2632 = vmatpush3.bf16.msra.mxu1 %v3201_v15 }
 0x6ba   :  { %2633 = vmatprep.subr.bf16.mxu1 %v2904_v0 }
 0x6bd   :  { %2635 = vmatpush3.bf16.msra.mxu1 %v3205_v18 }
 0x6be   :  { %2660 = vmatprep.subr.bf16.mxu1 %v2904_v0 }
 0x753   :  { %v3272_v28 = vpop.f32.mrb[8].mxu1 }
 0x754   :  { %v2023_v29 = vpop.f32.mrb[9].mxu1 }
 0x773   :  { %v840_v30 = vpop.f32.mrb[10].mxu1 }
 0x774   :  { %v841_v31 = vadd.f32 %v3089_v36, %v840_v30  ;;  %v2093_v32 = vpop.f32.mrb[11].mxu1 }
 0x776   :  { %2789 = vtanh.f32 %v841_v31 }
 0x780   :  { %v3275_v33 = vpop.eup %2789 }
 0x781   :  { %2127 = vmatmul.mubr.f32.vlgmr.msra.gmra.mrb[8].mxu0 %v3275_v33 }
 0x782   :  { %2638 = vmatpush3.bf16.msra.mxu0 %v3173_v58  ;;  %2196 = vmatprep.mubr.msk.f32.mxu0 %vm2905_vm0, %v2906_v1 }
 0x783   :  { %2639 = vmatprep.subr.bf16.mxu0 %v2904_v0 }
 0x786   :  { %2641 = vmatpush3.bf16.msra.mxu0 %v3179_v62 }
 0x787   :  { %2642 = vmatprep.subr.bf16.mxu0 %v2904_v0 }
 0x78a   :  { %2644 = vmatpush3.bf16.msra.mxu0 %v3185_v3 }
 0x78b   :  { %2645 = vmatprep.subr.bf16.mxu0 %v2904_v0 }
 0x78e   :  { %2647 = vmatpush3.bf16.msra.mxu0 %v3189_v6 }
 0x78f   :  { %2648 = vmatprep.subr.bf16.mxu0 %v2904_v0 }
 0x792   :  { %2650 = vmatpush3.bf16.msra.mxu0 %v3193_v9 }
 0x793   :  { %2651 = vmatprep.subr.bf16.mxu0 %v2904_v0 }
 0x796   :  { %2653 = vmatpush3.bf16.msra.mxu0 %v3197_v12 }
 0x797   :  { %2654 = vmatprep.subr.bf16.mxu0 %v2904_v0 }
 0x79a   :  { %2656 = vmatpush3.bf16.msra.mxu0 %v3201_v15 }
 0x79b   :  { %2657 = vmatprep.subr.bf16.mxu0 %v2904_v0 }
 0x79e   :  { %2659 = vmatpush3.bf16.msra.mxu0 %v3205_v18 }
 0x79f   :  { %2684 = vmatprep.subr.bf16.mxu0 %v2904_v0 }
 0x854   :  { %v913_v34 = vpop.f32.mrb[8].mxu0 }
 0x855   :  { %v914_v35 = vadd.f32 %v3110_v41, %v913_v34  ;;  %v2128_v36 = vpop.f32.mrb[9].mxu0 }
 0x857   :  { %2791 = vtanh.f32 %v914_v35 }
 0x861   :  { %v3297_v37 = vpop.eup %2791 }
 0x862   :  { %2162 = vmatmul.mubr.f32.vlgmr.msra.gmra.mrb[12].mxu1 %v3297_v37 }
 0x863   :  { %2662 = vmatpush3.bf16.msra.mxu1 %v3173_v58  ;;  %2231 = vmatprep.mubr.msk.f32.mxu1 %vm2905_vm0, %v2906_v1 }
 0x864   :  { %2663 = vmatprep.subr.bf16.mxu1 %v2904_v0 }
 0x867   :  { %2665 = vmatpush3.bf16.msra.mxu1 %v3179_v62 }
 0x868   :  { %2666 = vmatprep.subr.bf16.mxu1 %v2904_v0 }
 0x86b   :  { %2668 = vmatpush3.bf16.msra.mxu1 %v3185_v3 }
 0x86c   :  { %2669 = vmatprep.subr.bf16.mxu1 %v2904_v0 }
 0x86f   :  { %2671 = vmatpush3.bf16.msra.mxu1 %v3189_v6 }
 0x870   :  { %2672 = vmatprep.subr.bf16.mxu1 %v2904_v0 }
 0x873   :  { %2674 = vmatpush3.bf16.msra.mxu1 %v3193_v9 }
 0x874   :  { %2675 = vmatprep.subr.bf16.mxu1 %v2904_v0 }
 0x877   :  { %2677 = vmatpush3.bf16.msra.mxu1 %v3197_v12 }
 0x878   :  { %2678 = vmatprep.subr.bf16.mxu1 %v2904_v0 }
 0x87b   :  { %2680 = vmatpush3.bf16.msra.mxu1 %v3201_v15 }
 0x87c   :  { %2681 = vmatprep.subr.bf16.mxu1 %v2904_v0 }
 0x87f   :  { %2683 = vmatpush3.bf16.msra.mxu1 %v3205_v18 }
 0x880   :  { %2708 = vmatprep.subr.bf16.mxu1 %v2904_v0 }
 0x935   :  { %v986_v38 = vpop.f32.mrb[12].mxu1 }
 0x936   :  { %v987_v39 = vadd.f32 %v3131_v46, %v986_v38  ;;  %v2163_v40 = vpop.f32.mrb[13].mxu1  ;;  %v1293_v46 = vld [vmem:[#allocation8 + $0x8] sm:$0xff] }
 0x938   :  { %2793 = vtanh.f32 %v987_v39 }
 0x942   :  { %v3319_v41 = vpop.eup %2793 }
 0x943   :  { %2197 = vmatmul.mubr.f32.vlgmr.msra.gmra.mrb[10].mxu0 %v3319_v41 }
 0x944   :  { %2686 = vmatpush3.bf16.msra.mxu0 %v3173_v58  ;;  %2266 = vmatprep.mubr.msk.f32.mxu0 %vm2905_vm0, %v2906_v1 }
 0x945   :  { %2687 = vmatprep.subr.bf16.mxu0 %v2904_v0 }
 0x948   :  { %2689 = vmatpush3.bf16.msra.mxu0 %v3179_v62 }
 0x949   :  { %2690 = vmatprep.subr.bf16.mxu0 %v2904_v0 }
 0x94c   :  { %2692 = vmatpush3.bf16.msra.mxu0 %v3185_v3 }
 0x94d   :  { %2693 = vmatprep.subr.bf16.mxu0 %v2904_v0 }
 0x950   :  { %2695 = vmatpush3.bf16.msra.mxu0 %v3189_v6 }
 0x951   :  { %2696 = vmatprep.subr.bf16.mxu0 %v2904_v0 }
 0x954   :  { %2698 = vmatpush3.bf16.msra.mxu0 %v3193_v9 }
 0x955   :  { %2699 = vmatprep.subr.bf16.mxu0 %v2904_v0 }
 0x958   :  { %2701 = vmatpush3.bf16.msra.mxu0 %v3197_v12 }
 0x959   :  { %2702 = vmatprep.subr.bf16.mxu0 %v2904_v0 }
 0x95c   :  { %2704 = vmatpush3.bf16.msra.mxu0 %v3201_v15 }
 0x95d   :  { %2705 = vmatprep.subr.bf16.mxu0 %v2904_v0 }
 0x960   :  { %2707 = vmatpush3.bf16.msra.mxu0 %v3205_v18 }
 0xa16   :  { %v1059_v42 = vpop.f32.mrb[10].mxu0 }
 0xa17   :  { %v1060_v43 = vadd.f32 %v3152_v51, %v1059_v42  ;;  %v2198_v44 = vpop.f32.mrb[11].mxu0  ;;  %v1294_v51 = vld [vmem:[#allocation8 + $0x10] sm:$0xff] }
 0xa18   :  { %v2736_v53 = vpack.c.bf16 %v1295_v52, %v1294_v51 }
 0xa19   :  { %2795 = vtanh.f32 %v1060_v43 }
 0xa23   :  { %v3340_v45 = vpop.eup %2795 }
 0xa24   :  { %2232 = vmatmul.mubr.f32.vlgmr.msra.gmra.mrb[14].mxu1 %v3340_v45 }
 0xa25   :  { %2710 = vmatpush3.bf16.msra.mxu1 %v3173_v58  ;;  %2301 = vmatprep.mubr.msk.f32.mxu1 %vm2905_vm0, %v2906_v1  ;;  %v1292_v1 = vld [vmem:[#allocation8] sm:$0xff]  ;;  %v1299_v58 = vld [vmem:[#allocation8 + $0x38] sm:$0xff] }
 0xa26   :  { %2711 = vmatprep.subr.bf16.mxu1 %v2904_v0  ;;  %v2732_v47 = vpack.c.bf16 %v1293_v46, %v1292_v1  ;;  %v2744_v59 = vpack.c.bf16 %v1299_v58, %v1298_v57 }
 0xa28   :  { %2733 = vmatprep.subr.bf16.mxu0 %v2732_v47 }
 0xa29   :  { %2713 = vmatpush3.bf16.msra.mxu1 %v3179_v62 }
 0xa2a   :  { %2714 = vmatprep.subr.bf16.mxu1 %v2904_v0 }
 0xa2d   :  { %2716 = vmatpush3.bf16.msra.mxu1 %v3185_v3  ;;  %v2752_v3 = vpack.c.bf16 %v1303_v2, %v1302_v63 }
 0xa2e   :  { %2717 = vmatprep.subr.bf16.mxu1 %v2904_v0 }
 0xa31   :  { %2719 = vmatpush3.bf16.msra.mxu1 %v3189_v6  ;;  %v2756_v6 = vpack.c.bf16 %v1305_v5, %v1304_v4 }
 0xa32   :  { %2720 = vmatprep.subr.bf16.mxu1 %v2904_v0 }
 0xa35   :  { %2722 = vmatpush3.bf16.msra.mxu1 %v3193_v9  ;;  %v2760_v9 = vpack.c.bf16 %v1307_v8, %v1306_v7 }
 0xa36   :  { %2723 = vmatprep.subr.bf16.mxu1 %v2904_v0 }
 0xa39   :  { %2725 = vmatpush3.bf16.msra.mxu1 %v3197_v12 }
 0xa3a   :  { %2726 = vmatprep.subr.bf16.mxu1 %v2904_v0 }
 0xa3d   :  { %2728 = vmatpush3.bf16.msra.mxu1 %v3201_v15 }
 0xa3e   :  { %2729 = vmatprep.subr.bf16.mxu1 %v2904_v0  ;;  %v2740_v0 = vpack.c.bf16 %v1297_v56, %v1296_v55 }
 0xa41   :  { %2731 = vmatpush3.bf16.msra.mxu1 %v3205_v18 }
 0xaf7   :  { %v1132_v48 = vpop.f32.mrb[14].mxu1 }
 0xaf8   :  { %v1133_v49 = vadd.f32 %v3175_v61, %v1132_v48  ;;  %v2233_v50 = vpop.f32.mrb[15].mxu1  ;;  %v1301_v61 = vld [vmem:[#allocation8 + $0x48] sm:$0xff] }
 0xaf9   :  { %v2748_v62 = vpack.c.bf16 %v1301_v61, %v1300_v60 }
 0xafa   :  { %2797 = vtanh.f32 %v1133_v49 }
 0xb04   :  { %v2798_v54 = vpop.eup %2797 }
 0xb05   :  { %2267 = vmatmul.mubr.f32.vlgmr.msra.gmra.mrb[12].mxu0 %v2798_v54 }
 0xb06   :  { %2735 = vmatpush3.bf16.msra.mxu0 %v2732_v47  ;;  %2336 = vmatprep.mubr.f32.mxu0 %v3251_v27  ;;  %v609_v27 = vld [vmem:[#allocation3 + $0x38] sm:$0xff] }
 0xb07   :  { %2737 = vmatprep.subr.bf16.mxu0 %v2736_v53  ;;  %v677_v29 = vadd.f32 %v3272_v28, %v609_v27 }
 0xb0a   :  { %2739 = vmatpush3.bf16.msra.mxu0 %v2736_v53 }
 0xb0b   :  { %2741 = vmatprep.subr.bf16.mxu0 %v2740_v0 }
 0xb0e   :  { %2743 = vmatpush3.bf16.msra.mxu0 %v2740_v0 }
 0xb0f   :  { %2745 = vmatprep.subr.bf16.mxu0 %v2744_v59 }
 0xb12   :  { %2747 = vmatpush3.bf16.msra.mxu0 %v2744_v59 }
 0xb13   :  { %2749 = vmatprep.subr.bf16.mxu0 %v2748_v62 }
 0xb16   :  { %2751 = vmatpush3.bf16.msra.mxu0 %v2748_v62 }
 0xb17   :  { %2753 = vmatprep.subr.bf16.mxu0 %v2752_v3 }
 0xb1a   :  { %2755 = vmatpush3.bf16.msra.mxu0 %v2752_v3 }
 0xb1b   :  { %2757 = vmatprep.subr.bf16.mxu0 %v2756_v6 }
 0xb1e   :  { %2759 = vmatpush3.bf16.msra.mxu0 %v2756_v6 }
 0xb1f   :  { %2761 = vmatprep.subr.bf16.mxu0 %v2760_v9 }
 0xb22   :  { %2763 = vmatpush3.bf16.msra.mxu0 %v2760_v9 }
 0xb25   :  { %2337 = vmatmul.mubr.f32.vlgmr.msra.gmra.mrb[14].mxu0 %v3275_v33 }
 0xb26   :  { %2339 = vmatprep.mubr.f32.mxu0 %v3297_v37 }
 0xb29   :  { %2340 = vmatmul.mubr.f32.gmra.mrb[16].mxu0 %v3319_v41 }
 0xb2a   :  { %2342 = vmatprep.mubr.f32.mxu0 %v3340_v45 }
 0xb2d   :  { %2343 = vmatmul.mubr.f32.gmra.mrb[18].mxu0 %v2798_v54 }
 0xbd8   :  { %v1205_v10 = vpop.f32.mrb[12].mxu0 }
 0xbd9   :  { %v1206_v11 = vadd.f32 %v3229_v23, %v1205_v10  ;;  %v2268_v12 = vpop.f32.mrb[13].mxu0 }
 0xbdb   :  { %2799 = vtanh.f32 %v1206_v11 }
 0xbdc   :  { %2801 = vtanh.f32 %v677_v29 }
 0xbe5   :  { %v2800_v13 = vpop.eup %2799 }
 0xbe6   :  { %2302 = vmatmul.mubr.f32.vlgmr.msra.gmra.mrb[16].mxu1 %v2800_v13  ;;  %2345 = vmatprep.mubr.f32.mxu0 %v2800_v13  ;;  %v2802_v30 = vpop.eup %2801 }
 0xbf8   :  { %v2338_v15 = vpop.f32.mrb[14].mxu0 }
 0xbf9   :  { %v1387_v16 = vadd.f32 %v2338_v15, %v1447_v14  ;;  %v1381_v17 = vpop.f32.mrb[15].mxu0 }
 0xbfa   :  { %v1382_v18 = vadd.f32 %v1447_v14, %v1381_v17 }
 0xbfb   :  { %1421 = vst [vmem:[#allocation9 + $0x8] sm:$0xff] %v1387_v16 }
 0xbfc   :  { %1420 = vst [vmem:[#allocation9] sm:$0xff] %v1382_v18  ;;  %v2341_v19 = vpop.f32.mrb[16].mxu0 }
 0xbfd   :  { %v1397_v20 = vadd.f32 %v2341_v19, %v1447_v14  ;;  %v1391_v21 = vpop.f32.mrb[17].mxu0 }
 0xbfe   :  { %v1392_v22 = vadd.f32 %v1447_v14, %v1391_v21 }
 0xbff   :  { %1423 = vst [vmem:[#allocation9 + $0x18] sm:$0xff] %v1397_v20 }
 0xc00   :  { %1422 = vst [vmem:[#allocation9 + $0x10] sm:$0xff] %v1392_v22  ;;  %v2344_v23 = vpop.f32.mrb[18].mxu0 }
 0xc01   :  { %v1407_v24 = vadd.f32 %v2344_v23, %v1447_v14  ;;  %v1401_v25 = vpop.f32.mrb[19].mxu0 }
 0xc02   :  { %v1402_v26 = vadd.f32 %v1447_v14, %v1401_v25 }
 0xc03   :  { %1425 = vst [vmem:[#allocation9 + $0x28] sm:$0xff] %v1407_v24 }
 0xc04   :  { %1424 = vst [vmem:[#allocation9 + $0x20] sm:$0xff] %v1402_v26 }
 0xcb9   :  { %v1278_v31 = vpop.f32.mrb[16].mxu1 }
 0xcba   :  { %v1279_v32 = vadd.f32 %v2802_v30, %v1278_v31  ;;  %v2303_v33 = vpop.f32.mrb[17].mxu1 }
 0xcbc   :  { %2803 = vtanh.f32 %v1279_v32 }
 0xcc6   :  { %v2804_v34 = vpop.eup %2803 }
 0xcc7   :  { %2346 = vmatmul.mubr.f32.gmra.mrb[20].mxu0 %v2804_v34 }
 0xd9a   :  { %v2347_v35 = vpop.f32.mrb[20].mxu0 }
 0xd9b   :  { %v1417_v36 = vadd.f32 %v2347_v35, %v1447_v14  ;;  %v1411_v37 = vpop.f32.mrb[21].mxu0 }
 0xd9c   :  { %v1412_v38 = vadd.f32 %v1447_v14, %v1411_v37 }
 0xd9d   :  { %1427 = vst [vmem:[#allocation9 + $0x38] sm:$0xff] %v1417_v36 }
 0xd9e   :  { %1426 = vst [vmem:[#allocation9 + $0x30] sm:$0xff] %v1412_v38 }
 0xd9f   :  { %2882 = shalt.err (!%p2879_p0)
}
 0xda0   :  { %s2883_s12 = scalar_lea.hbm %s3391_s5, 1024 }
 0xda1   :  { %p2884_p1 = scmp.ne.s32.totalorder %s3391_s5, %s2883_s12  ;;  %p2887_p2 = scmp.lt.u32.totalorder %s2883_s12, %s3391_s5 }
 0xda3   :  { %p2889_p3 = pnand %p2887_p2, %p2884_p1 }
 0xda5   :  { %2892 = shalt.err (!%p2889_p3)
}
 0xda6   :  { %1439 = dma.vmem_to_hbm [thread:$0]  %s1434_s8, 1024, %s3391_s5, [#allocation5], %s2901_s30, %s2901_s30, %s2902_s6  }
 0xda7   :  { %2897 = dma.done.wait [#allocation5], 1024  }
 0xda8   :  { %2898 = vsyncadd [#allocation5], 4294966272 }
 0xda9   :  { %1443 = vsyncpa [#allocation4], 1 }
 0xdaa   :  { %1444 = vsyncpa [#allocation7], 1 }
 0xdab   :  { %1445 = vsyncpa [#allocation5], 1 }

</bundles_post_ra>
